<compile_context>
chip_gen: v6e
topology: v6e:2x2x1
jax: 0.10.0
libtpu: 0.0.40
codegen_flags: <defaults>
</compile_context>

<pallas_src>
import functools

import jax
import jax.numpy as jnp
from jax.experimental import pallas as pl
from jax.experimental.pallas import tpu as pltpu


# ----------------------------------------------------------------------------
# Fused kernel: GRU encoder (PyTorch gate order r, z, n) + both decoders + CE.
# ----------------------------------------------------------------------------
def ergcn_fused_kernel(
    es_ref, er_ref, hist_ref,
    wie_r_ref, wie_z_ref, wie_n_ref,          # input weights, entity half, per gate
    wir_r_ref, wir_z_ref, wir_n_ref,          # input weights, relation half, per gate
    whh_r_ref, whh_z_ref, whh_n_ref,          # hidden weights, per gate
    b_r_ref, b_z_ref, b_in_ref, b_hn_ref,     # biases (r/z hh-bias pre-folded)
    ws_es_ref, ws_er_ref, ws_h_ref, bs_ref,   # linear_s split by feature block
    wr_es_ref, wr_h_ref, br_ref,              # linear_r split by feature block
    lab_s_ref, lab_r_ref,
    loss_ref, *, alpha, seq_len):
    B, H = es_ref.shape
    f32 = jnp.float32

    es = es_ref[...]
    er = er_ref[...]
    hist = hist_ref[...]                                               # (T*B, H)

    # ---- hoisted, non-recurrent input projections -------------------------
    # Relation half is time-invariant in this stand-in -> projected once.
    gi_rel_r = jnp.dot(er, wir_r_ref[...], preferred_element_type=f32) + b_r_ref[...]
    gi_rel_z = jnp.dot(er, wir_z_ref[...], preferred_element_type=f32) + b_z_ref[...]
    gi_rel_n = jnp.dot(er, wir_n_ref[...], preferred_element_type=f32) + b_in_ref[...]
    # Entity-history half: batched over all T steps, one MXU pass per gate.
    gi_ent_r = jnp.dot(hist, wie_r_ref[...], preferred_element_type=f32)   # (T*B, H)
    gi_ent_z = jnp.dot(hist, wie_z_ref[...], preferred_element_type=f32)
    gi_ent_n = jnp.dot(hist, wie_n_ref[...], preferred_element_type=f32)

    w_hr = whh_r_ref[...]
    w_hz = whh_z_ref[...]
    w_hn = whh_n_ref[...]
    b_hn = jnp.broadcast_to(b_hn_ref[...], (B, H))    # single hoisted broadcast

    # ---- serial recurrence (T static & small -> fully unrolled) -----------
    h = jnp.zeros((B, H), f32)
    for t in range(seq_len):
        lo = t * B
        r = jax.nn.sigmoid(gi_ent_r[lo:lo + B, :] + gi_rel_r
                           + jnp.dot(h, w_hr, preferred_element_type=f32))
        z = jax.nn.sigmoid(gi_ent_z[lo:lo + B, :] + gi_rel_z
                           + jnp.dot(h, w_hz, preferred_element_type=f32))
        n = jnp.tanh(gi_ent_n[lo:lo + B, :] + gi_rel_n
                     + r * (jnp.dot(h, w_hn, preferred_element_type=f32) + b_hn))
        h = (1.0 - z) * n + z * h

    # ---- fused decoders: split-block matmuls, no feature concats ----------
    logits_s = (jnp.dot(es, ws_es_ref[...], preferred_element_type=f32)
                + jnp.dot(er, ws_er_ref[...], preferred_element_type=f32)
                + jnp.dot(h, ws_h_ref[...], preferred_element_type=f32)
                + bs_ref[...])                                          # (B, num_e)
    logits_r = (jnp.dot(es, wr_es_ref[...], preferred_element_type=f32)
                + jnp.dot(h, wr_h_ref[...], preferred_element_type=f32)
                + br_ref[...])                                          # (B, num_r)

    def mean_ce(logits, lab):
        m = jnp.max(logits, axis=-1, keepdims=True)
        lse = m + jnp.log(jnp.sum(jnp.exp(logits - m), axis=-1, keepdims=True))
        col = jax.lax.broadcasted_iota(jnp.int32, logits.shape, 1)
        picked = jnp.sum(jnp.where(col == lab, logits, 0.0),
                         axis=-1, keepdims=True)
        return jnp.mean(lse - picked)

    loss_s = mean_ce(logits_s, lab_s_ref[...])
    loss_r = mean_ce(logits_r, lab_r_ref[...])
    loss_ref[...] = jnp.reshape(loss_s + alpha * loss_r, (1, 1))


def ergcn_loss(es, er, hist_ent_flat, params, lab_s, lab_r, *, alpha, seq_len):
    # TODO(synk): at production num_e (tens of thousands) tile the linear_s
    # class dim over a trailing "arbitrary" grid axis with an online logsumexp
    # + picked-logit accumulator (mandatory within v7x's 64 MiB VMEM), use
    # >=512-lane bf16 weight tiles with pl.Buffered pipelining, and add a
    # "parallel" axis for v7x's two TensorCores.  At these demo shapes a single
    # fully VMEM-resident call is optimal.
    vmem = pl.BlockSpec(memory_space=pltpu.MemorySpace.VMEM)
    kernel = functools.partial(ergcn_fused_kernel, alpha=alpha, seq_len=seq_len)
    loss = pl.pallas_call(
        kernel,
        out_shape=jax.ShapeDtypeStruct((1, 1), jnp.float32),
        in_specs=[vmem] * 25,
        out_specs=vmem,
    )(es, er, hist_ent_flat,
      params['w_ie_r'], params['w_ie_z'], params['w_ie_n'],
      params['w_ir_r'], params['w_ir_z'], params['w_ir_n'],
      params['w_hh_r'], params['w_hh_z'], params['w_hh_n'],
      params['b_r'], params['b_z'], params['b_in'], params['b_hn'],
      params['ws_es'], params['ws_er'], params['ws_h'], params['b_s'],
      params['wr_es'], params['wr_h'], params['b_r_dec'],
      lab_s, lab_r)
    return loss[0, 0]


# ----------------------------------------------------------------------------
# Parameter initialization (same logical shapes as ergcn.__init__, then laid
# out for the kernel: per-gate / per-input-half GRU weights, r/z hh-biases
# folded into the ih biases, decoder weights pre-transposed & split per block).
# ----------------------------------------------------------------------------
def init_params(key, num_e, num_r, h_dim):
    ks = jax.random.split(key, 11)
    s = 0.1
    H = h_dim

    w_ih = jax.random.normal(ks[3], (2 * H, 3 * H)) * s   # rows = [ent ; rel]
    w_hh = jax.random.normal(ks[4], (H, 3 * H)) * s
    b_ih = jax.random.normal(ks[5], (3 * H,)) * s
    b_hh = jax.random.normal(ks[6], (3 * H,)) * s

    def gate(a, g):                                       # gate order r | z | n
        return a[..., g * H:(g + 1) * H]

    w_s = jax.random.normal(ks[7], (3 * H, num_e)) * s    # linear_s.weight.T
    b_s = jax.random.normal(ks[8], (num_e,)) * s
    w_r = jax.random.normal(ks[9], (2 * H, num_r)) * s    # linear_r.weight.T
    b_r = jax.random.normal(ks[10], (num_r,)) * s

    # TODO(synk): store decoder (and optionally GRU) weights in bf16 at
    # production scale; the kernel already accumulates matmuls in f32.
    return {
        'ent_embeds':  jax.random.normal(ks[0], (num_e, H)) * s,
        'rel_embed_s': jax.random.normal(ks[1], (num_r, H)) * s,
        'rel_embed_o': jax.random.normal(ks[2], (num_r, H)) * s,
        # GRU, per-gate / per-half layout
        'w_ie_r': gate(w_ih[:H], 0), 'w_ie_z': gate(w_ih[:H], 1), 'w_ie_n': gate(w_ih[:H], 2),
        'w_ir_r': gate(w_ih[H:], 0), 'w_ir_z': gate(w_ih[H:], 1), 'w_ir_n': gate(w_ih[H:], 2),
        'w_hh_r': gate(w_hh, 0), 'w_hh_z': gate(w_hh, 1), 'w_hh_n': gate(w_hh, 2),
        'b_r':  (gate(b_ih, 0) + gate(b_hh, 0)).reshape(1, H),
        'b_z':  (gate(b_ih, 1) + gate(b_hh, 1)).reshape(1, H),
        'b_in': gate(b_ih, 2).reshape(1, H),
        'b_hn': gate(b_hh, 2).reshape(1, H),
        # decoders, split per feature block (es | er | hidden)
        'ws_es': w_s[:H], 'ws_er': w_s[H:2 * H], 'ws_h': w_s[2 * H:],
        'b_s': b_s.reshape(1, num_e),
        'wr_es': w_r[:H], 'wr_h': w_r[H:],
        'b_r_dec': b_r.reshape(1, num_r),
    }


# ----------------------------------------------------------------------------
# Forward pass (mirrors ergcn.forward, non-reverse branch; alpha = 0.1,
# dropout p=0.0 is the identity; idx from the aggregator is identity here).
# ----------------------------------------------------------------------------
def ergcn_forward(params, datas, num_e, num_r, h_dim, seq_len, alpha=0.1,
                  reverse=False):
    ent = params['ent_embeds']
    if reverse:
        rel_embeds = jnp.concatenate([params['rel_embed_o'],
                                      params['rel_embed_s']], axis=0)
        es = ent[datas[:, 2]]
    else:
        rel_embeds = jnp.concatenate([params['rel_embed_s'],
                                      params['rel_embed_o']], axis=0)
        es = ent[datas[:, 0]]
    er = rel_embeds[datas[:, 1]]

    # TODO(synk): utils.get_history_batch + RGCNaggregator are external graph /
    # history-dict lookups not defined in the reference; a deterministic,
    # time-major stand-in entity history is built from the embedding table
    # instead (the relation half is time-invariant and projected once in-kernel).
    B = datas.shape[0]
    t_idx = jnp.arange(seq_len)
    hist_ent = ent[(datas[:, 0][None, :] + t_idx[:, None]) % num_e]    # (T,B,H)
    hist_ent_flat = hist_ent.reshape(seq_len * B, h_dim)               # (T*B,H)

    o_labels = datas[:, 2].astype(jnp.int32).reshape(B, 1)
    r_labels = datas[:, 1].astype(jnp.int32).reshape(B, 1)

    return ergcn_loss(es, er, hist_ent_flat, params, o_labels, r_labels,
                      alpha=alpha, seq_len=seq_len)


if __name__ == "__main__":
    num_e, num_r, h_dim, seq_len, batch = 128, 16, 32, 8, 8

    key = jax.random.PRNGKey(0)
    pkey, k_s, k_r, k_o = jax.random.split(key, 4)
    params = init_params(pkey, num_e, num_r, h_dim)

    s = jax.random.randint(k_s, (batch,), 0, num_e, dtype=jnp.int32)
    r = jax.random.randint(k_r, (batch,), 0, num_r, dtype=jnp.int32)
    o = jax.random.randint(k_o, (batch,), 0, num_e, dtype=jnp.int32)
    t = jnp.arange(batch, dtype=jnp.int32)
    datas = jnp.stack([s, r, o, t], axis=1)                            # (B, 4)

    loss = ergcn_forward(params, datas, num_e, num_r, h_dim, seq_len)
    loss = jax.block_until_ready(loss)
    assert bool(jnp.isfinite(loss))
    print("KERNEL_OK")
</pallas_src>

<mosaic_0001>
module attributes {stable_mosaic.version = 11 : i64} {
  func.func @ergcn_fused_kernel(%arg0: memref<8x32xf32, #tpu.memory_space<vmem>>, %arg1: memref<8x32xf32, #tpu.memory_space<vmem>>, %arg2: memref<64x32xf32, #tpu.memory_space<vmem>>, %arg3: memref<32x32xf32, #tpu.memory_space<vmem>>, %arg4: memref<32x32xf32, #tpu.memory_space<vmem>>, %arg5: memref<32x32xf32, #tpu.memory_space<vmem>>, %arg6: memref<32x32xf32, #tpu.memory_space<vmem>>, %arg7: memref<32x32xf32, #tpu.memory_space<vmem>>, %arg8: memref<32x32xf32, #tpu.memory_space<vmem>>, %arg9: memref<32x32xf32, #tpu.memory_space<vmem>>, %arg10: memref<32x32xf32, #tpu.memory_space<vmem>>, %arg11: memref<32x32xf32, #tpu.memory_space<vmem>>, %arg12: memref<1x32xf32, #tpu.memory_space<vmem>>, %arg13: memref<1x32xf32, #tpu.memory_space<vmem>>, %arg14: memref<1x32xf32, #tpu.memory_space<vmem>>, %arg15: memref<1x32xf32, #tpu.memory_space<vmem>>, %arg16: memref<32x128xf32, #tpu.memory_space<vmem>>, %arg17: memref<32x128xf32, #tpu.memory_space<vmem>>, %arg18: memref<32x128xf32, #tpu.memory_space<vmem>>, %arg19: memref<1x128xf32, #tpu.memory_space<vmem>>, %arg20: memref<32x16xf32, #tpu.memory_space<vmem>>, %arg21: memref<32x16xf32, #tpu.memory_space<vmem>>, %arg22: memref<1x16xf32, #tpu.memory_space<vmem>>, %arg23: memref<8x1xi32, #tpu.memory_space<vmem>>, %arg24: memref<8x1xi32, #tpu.memory_space<vmem>>, %arg25: memref<1x1xf32, #tpu.memory_space<vmem>>) attributes {dimension_semantics = [], scalar_prefetch = 0 : i64, scratch_operands = 0 : i64, tpu.core_type = #tpu.core_type<tc>} {
    %c0 = arith.constant 0 : index
    %c0_0 = arith.constant 0 : index
    %0 = vector.load %arg0[%c0, %c0_0] : memref<8x32xf32, #tpu.memory_space<vmem>>, vector<8x32xf32>
    %c0_1 = arith.constant 0 : index
    %c0_2 = arith.constant 0 : index
    %1 = vector.load %arg1[%c0_1, %c0_2] : memref<8x32xf32, #tpu.memory_space<vmem>>, vector<8x32xf32>
    %c0_3 = arith.constant 0 : index
    %c0_4 = arith.constant 0 : index
    %2 = vector.load %arg2[%c0_3, %c0_4] : memref<64x32xf32, #tpu.memory_space<vmem>>, vector<64x32xf32>
    %c0_5 = arith.constant 0 : index
    %c0_6 = arith.constant 0 : index
    %3 = vector.load %arg6[%c0_5, %c0_6] : memref<32x32xf32, #tpu.memory_space<vmem>>, vector<32x32xf32>
    %cst = arith.constant dense<0.000000e+00> : vector<8x32xf32>
    %4 = tpu.matmul %1, %3, %cst {dimension_numbers = #tpu.dot_dimension_numbers<[1], [0], [0], [1], [0, 0, 1, 1], [], []>} : vector<8x32xf32>, vector<32x32xf32>, vector<8x32xf32> -> vector<8x32xf32>
    %c0_7 = arith.constant 0 : index
    %c0_8 = arith.constant 0 : index
    %5 = vector.load %arg12[%c0_7, %c0_8] : memref<1x32xf32, #tpu.memory_space<vmem>>, vector<1x32xf32>
    %6 = vector.broadcast %5 : vector<1x32xf32> to vector<8x32xf32>
    %7 = arith.addf %4, %6 : vector<8x32xf32>
    %c0_9 = arith.constant 0 : index
    %c0_10 = arith.constant 0 : index
    %8 = vector.load %arg7[%c0_9, %c0_10] : memref<32x32xf32, #tpu.memory_space<vmem>>, vector<32x32xf32>
    %cst_11 = arith.constant dense<0.000000e+00> : vector<8x32xf32>
    %9 = tpu.matmul %1, %8, %cst_11 {dimension_numbers = #tpu.dot_dimension_numbers<[1], [0], [0], [1], [0, 0, 1, 1], [], []>} : vector<8x32xf32>, vector<32x32xf32>, vector<8x32xf32> -> vector<8x32xf32>
    %c0_12 = arith.constant 0 : index
    %c0_13 = arith.constant 0 : index
    %10 = vector.load %arg13[%c0_12, %c0_13] : memref<1x32xf32, #tpu.memory_space<vmem>>, vector<1x32xf32>
    %11 = vector.broadcast %10 : vector<1x32xf32> to vector<8x32xf32>
    %12 = arith.addf %9, %11 : vector<8x32xf32>
    %c0_14 = arith.constant 0 : index
    %c0_15 = arith.constant 0 : index
    %13 = vector.load %arg8[%c0_14, %c0_15] : memref<32x32xf32, #tpu.memory_space<vmem>>, vector<32x32xf32>
    %cst_16 = arith.constant dense<0.000000e+00> : vector<8x32xf32>
    %14 = tpu.matmul %1, %13, %cst_16 {dimension_numbers = #tpu.dot_dimension_numbers<[1], [0], [0], [1], [0, 0, 1, 1], [], []>} : vector<8x32xf32>, vector<32x32xf32>, vector<8x32xf32> -> vector<8x32xf32>
    %c0_17 = arith.constant 0 : index
    %c0_18 = arith.constant 0 : index
    %15 = vector.load %arg14[%c0_17, %c0_18] : memref<1x32xf32, #tpu.memory_space<vmem>>, vector<1x32xf32>
    %16 = vector.broadcast %15 : vector<1x32xf32> to vector<8x32xf32>
    %17 = arith.addf %14, %16 : vector<8x32xf32>
    %c0_19 = arith.constant 0 : index
    %c0_20 = arith.constant 0 : index
    %18 = vector.load %arg3[%c0_19, %c0_20] : memref<32x32xf32, #tpu.memory_space<vmem>>, vector<32x32xf32>
    %cst_21 = arith.constant dense<0.000000e+00> : vector<64x32xf32>
    %19 = tpu.matmul %2, %18, %cst_21 {dimension_numbers = #tpu.dot_dimension_numbers<[1], [0], [0], [1], [0, 0, 1, 1], [], []>} : vector<64x32xf32>, vector<32x32xf32>, vector<64x32xf32> -> vector<64x32xf32>
    %c0_22 = arith.constant 0 : index
    %c0_23 = arith.constant 0 : index
    %20 = vector.load %arg4[%c0_22, %c0_23] : memref<32x32xf32, #tpu.memory_space<vmem>>, vector<32x32xf32>
    %cst_24 = arith.constant dense<0.000000e+00> : vector<64x32xf32>
    %21 = tpu.matmul %2, %20, %cst_24 {dimension_numbers = #tpu.dot_dimension_numbers<[1], [0], [0], [1], [0, 0, 1, 1], [], []>} : vector<64x32xf32>, vector<32x32xf32>, vector<64x32xf32> -> vector<64x32xf32>
    %c0_25 = arith.constant 0 : index
    %c0_26 = arith.constant 0 : index
    %22 = vector.load %arg5[%c0_25, %c0_26] : memref<32x32xf32, #tpu.memory_space<vmem>>, vector<32x32xf32>
    %cst_27 = arith.constant dense<0.000000e+00> : vector<64x32xf32>
    %23 = tpu.matmul %2, %22, %cst_27 {dimension_numbers = #tpu.dot_dimension_numbers<[1], [0], [0], [1], [0, 0, 1, 1], [], []>} : vector<64x32xf32>, vector<32x32xf32>, vector<64x32xf32> -> vector<64x32xf32>
    %c0_28 = arith.constant 0 : index
    %c0_29 = arith.constant 0 : index
    %24 = vector.load %arg9[%c0_28, %c0_29] : memref<32x32xf32, #tpu.memory_space<vmem>>, vector<32x32xf32>
    %c0_30 = arith.constant 0 : index
    %c0_31 = arith.constant 0 : index
    %25 = vector.load %arg10[%c0_30, %c0_31] : memref<32x32xf32, #tpu.memory_space<vmem>>, vector<32x32xf32>
    %c0_32 = arith.constant 0 : index
    %c0_33 = arith.constant 0 : index
    %26 = vector.load %arg11[%c0_32, %c0_33] : memref<32x32xf32, #tpu.memory_space<vmem>>, vector<32x32xf32>
    %c0_34 = arith.constant 0 : index
    %c0_35 = arith.constant 0 : index
    %27 = vector.load %arg15[%c0_34, %c0_35] : memref<1x32xf32, #tpu.memory_space<vmem>>, vector<1x32xf32>
    %28 = vector.shape_cast %27 : vector<1x32xf32> to vector<1x32xf32>
    %29 = vector.broadcast %28 : vector<1x32xf32> to vector<8x32xf32>
    %cst_36 = arith.constant 0.000000e+00 : f32
    %30 = vector.broadcast %cst_36 : f32 to vector<8x32xf32>
    %31 = vector.extract_strided_slice %19 {offsets = [0, 0], sizes = [8, 32], strides = [1, 1]} : vector<64x32xf32> to vector<8x32xf32>
    %32 = arith.addf %31, %7 : vector<8x32xf32>
    %cst_37 = arith.constant dense<0.000000e+00> : vector<8x32xf32>
    %33 = tpu.matmul %30, %24, %cst_37 {dimension_numbers = #tpu.dot_dimension_numbers<[1], [0], [0], [1], [0, 0, 1, 1], [], []>} : vector<8x32xf32>, vector<32x32xf32>, vector<8x32xf32> -> vector<8x32xf32>
    %34 = arith.addf %32, %33 : vector<8x32xf32>
    %35 = arith.negf %34 : vector<8x32xf32>
    %36 = math.exp %35 : vector<8x32xf32>
    %cst_38 = arith.constant 1.000000e+00 : f32
    %37 = vector.broadcast %cst_38 : f32 to vector<8x32xf32>
    %38 = arith.addf %37, %36 : vector<8x32xf32>
    %39 = arith.divf %37, %38 : vector<8x32xf32>
    %40 = vector.extract_strided_slice %21 {offsets = [0, 0], sizes = [8, 32], strides = [1, 1]} : vector<64x32xf32> to vector<8x32xf32>
    %41 = arith.addf %40, %12 : vector<8x32xf32>
    %cst_39 = arith.constant dense<0.000000e+00> : vector<8x32xf32>
    %42 = tpu.matmul %30, %25, %cst_39 {dimension_numbers = #tpu.dot_dimension_numbers<[1], [0], [0], [1], [0, 0, 1, 1], [], []>} : vector<8x32xf32>, vector<32x32xf32>, vector<8x32xf32> -> vector<8x32xf32>
    %43 = arith.addf %41, %42 : vector<8x32xf32>
    %44 = arith.negf %43 : vector<8x32xf32>
    %45 = math.exp %44 : vector<8x32xf32>
    %cst_40 = arith.constant 1.000000e+00 : f32
    %46 = vector.broadcast %cst_40 : f32 to vector<8x32xf32>
    %47 = arith.addf %46, %45 : vector<8x32xf32>
    %48 = arith.divf %46, %47 : vector<8x32xf32>
    %49 = vector.extract_strided_slice %23 {offsets = [0, 0], sizes = [8, 32], strides = [1, 1]} : vector<64x32xf32> to vector<8x32xf32>
    %50 = arith.addf %49, %17 : vector<8x32xf32>
    %cst_41 = arith.constant dense<0.000000e+00> : vector<8x32xf32>
    %51 = tpu.matmul %30, %26, %cst_41 {dimension_numbers = #tpu.dot_dimension_numbers<[1], [0], [0], [1], [0, 0, 1, 1], [], []>} : vector<8x32xf32>, vector<32x32xf32>, vector<8x32xf32> -> vector<8x32xf32>
    %52 = arith.addf %51, %29 : vector<8x32xf32>
    %53 = arith.mulf %39, %52 : vector<8x32xf32>
    %54 = arith.addf %50, %53 : vector<8x32xf32>
    %55 = math.tanh %54 : vector<8x32xf32>
    %cst_42 = arith.constant 1.000000e+00 : f32
    %56 = vector.broadcast %cst_42 : f32 to vector<8x32xf32>
    %57 = arith.subf %56, %48 : vector<8x32xf32>
    %58 = arith.mulf %57, %55 : vector<8x32xf32>
    %59 = arith.mulf %48, %30 : vector<8x32xf32>
    %60 = arith.addf %58, %59 : vector<8x32xf32>
    %61 = vector.extract_strided_slice %19 {offsets = [8, 0], sizes = [8, 32], strides = [1, 1]} : vector<64x32xf32> to vector<8x32xf32>
    %62 = arith.addf %61, %7 : vector<8x32xf32>
    %cst_43 = arith.constant dense<0.000000e+00> : vector<8x32xf32>
    %63 = tpu.matmul %60, %24, %cst_43 {dimension_numbers = #tpu.dot_dimension_numbers<[1], [0], [0], [1], [0, 0, 1, 1], [], []>} : vector<8x32xf32>, vector<32x32xf32>, vector<8x32xf32> -> vector<8x32xf32>
    %64 = arith.addf %62, %63 : vector<8x32xf32>
    %65 = arith.negf %64 : vector<8x32xf32>
    %66 = math.exp %65 : vector<8x32xf32>
    %cst_44 = arith.constant 1.000000e+00 : f32
    %67 = vector.broadcast %cst_44 : f32 to vector<8x32xf32>
    %68 = arith.addf %67, %66 : vector<8x32xf32>
    %69 = arith.divf %67, %68 : vector<8x32xf32>
    %70 = vector.extract_strided_slice %21 {offsets = [8, 0], sizes = [8, 32], strides = [1, 1]} : vector<64x32xf32> to vector<8x32xf32>
    %71 = arith.addf %70, %12 : vector<8x32xf32>
    %cst_45 = arith.constant dense<0.000000e+00> : vector<8x32xf32>
    %72 = tpu.matmul %60, %25, %cst_45 {dimension_numbers = #tpu.dot_dimension_numbers<[1], [0], [0], [1], [0, 0, 1, 1], [], []>} : vector<8x32xf32>, vector<32x32xf32>, vector<8x32xf32> -> vector<8x32xf32>
    %73 = arith.addf %71, %72 : vector<8x32xf32>
    %74 = arith.negf %73 : vector<8x32xf32>
    %75 = math.exp %74 : vector<8x32xf32>
    %cst_46 = arith.constant 1.000000e+00 : f32
    %76 = vector.broadcast %cst_46 : f32 to vector<8x32xf32>
    %77 = arith.addf %76, %75 : vector<8x32xf32>
    %78 = arith.divf %76, %77 : vector<8x32xf32>
    %79 = vector.extract_strided_slice %23 {offsets = [8, 0], sizes = [8, 32], strides = [1, 1]} : vector<64x32xf32> to vector<8x32xf32>
    %80 = arith.addf %79, %17 : vector<8x32xf32>
    %cst_47 = arith.constant dense<0.000000e+00> : vector<8x32xf32>
    %81 = tpu.matmul %60, %26, %cst_47 {dimension_numbers = #tpu.dot_dimension_numbers<[1], [0], [0], [1], [0, 0, 1, 1], [], []>} : vector<8x32xf32>, vector<32x32xf32>, vector<8x32xf32> -> vector<8x32xf32>
    %82 = arith.addf %81, %29 : vector<8x32xf32>
    %83 = arith.mulf %69, %82 : vector<8x32xf32>
    %84 = arith.addf %80, %83 : vector<8x32xf32>
    %85 = math.tanh %84 : vector<8x32xf32>
    %cst_48 = arith.constant 1.000000e+00 : f32
    %86 = vector.broadcast %cst_48 : f32 to vector<8x32xf32>
    %87 = arith.subf %86, %78 : vector<8x32xf32>
    %88 = arith.mulf %87, %85 : vector<8x32xf32>
    %89 = arith.mulf %78, %60 : vector<8x32xf32>
    %90 = arith.addf %88, %89 : vector<8x32xf32>
    %91 = vector.extract_strided_slice %19 {offsets = [16, 0], sizes = [8, 32], strides = [1, 1]} : vector<64x32xf32> to vector<8x32xf32>
    %92 = arith.addf %91, %7 : vector<8x32xf32>
    %cst_49 = arith.constant dense<0.000000e+00> : vector<8x32xf32>
    %93 = tpu.matmul %90, %24, %cst_49 {dimension_numbers = #tpu.dot_dimension_numbers<[1], [0], [0], [1], [0, 0, 1, 1], [], []>} : vector<8x32xf32>, vector<32x32xf32>, vector<8x32xf32> -> vector<8x32xf32>
    %94 = arith.addf %92, %93 : vector<8x32xf32>
    %95 = arith.negf %94 : vector<8x32xf32>
    %96 = math.exp %95 : vector<8x32xf32>
    %cst_50 = arith.constant 1.000000e+00 : f32
    %97 = vector.broadcast %cst_50 : f32 to vector<8x32xf32>
    %98 = arith.addf %97, %96 : vector<8x32xf32>
    %99 = arith.divf %97, %98 : vector<8x32xf32>
    %100 = vector.extract_strided_slice %21 {offsets = [16, 0], sizes = [8, 32], strides = [1, 1]} : vector<64x32xf32> to vector<8x32xf32>
    %101 = arith.addf %100, %12 : vector<8x32xf32>
    %cst_51 = arith.constant dense<0.000000e+00> : vector<8x32xf32>
    %102 = tpu.matmul %90, %25, %cst_51 {dimension_numbers = #tpu.dot_dimension_numbers<[1], [0], [0], [1], [0, 0, 1, 1], [], []>} : vector<8x32xf32>, vector<32x32xf32>, vector<8x32xf32> -> vector<8x32xf32>
    %103 = arith.addf %101, %102 : vector<8x32xf32>
    %104 = arith.negf %103 : vector<8x32xf32>
    %105 = math.exp %104 : vector<8x32xf32>
    %cst_52 = arith.constant 1.000000e+00 : f32
    %106 = vector.broadcast %cst_52 : f32 to vector<8x32xf32>
    %107 = arith.addf %106, %105 : vector<8x32xf32>
    %108 = arith.divf %106, %107 : vector<8x32xf32>
    %109 = vector.extract_strided_slice %23 {offsets = [16, 0], sizes = [8, 32], strides = [1, 1]} : vector<64x32xf32> to vector<8x32xf32>
    %110 = arith.addf %109, %17 : vector<8x32xf32>
    %cst_53 = arith.constant dense<0.000000e+00> : vector<8x32xf32>
    %111 = tpu.matmul %90, %26, %cst_53 {dimension_numbers = #tpu.dot_dimension_numbers<[1], [0], [0], [1], [0, 0, 1, 1], [], []>} : vector<8x32xf32>, vector<32x32xf32>, vector<8x32xf32> -> vector<8x32xf32>
    %112 = arith.addf %111, %29 : vector<8x32xf32>
    %113 = arith.mulf %99, %112 : vector<8x32xf32>
    %114 = arith.addf %110, %113 : vector<8x32xf32>
    %115 = math.tanh %114 : vector<8x32xf32>
    %cst_54 = arith.constant 1.000000e+00 : f32
    %116 = vector.broadcast %cst_54 : f32 to vector<8x32xf32>
    %117 = arith.subf %116, %108 : vector<8x32xf32>
    %118 = arith.mulf %117, %115 : vector<8x32xf32>
    %119 = arith.mulf %108, %90 : vector<8x32xf32>
    %120 = arith.addf %118, %119 : vector<8x32xf32>
    %121 = vector.extract_strided_slice %19 {offsets = [24, 0], sizes = [8, 32], strides = [1, 1]} : vector<64x32xf32> to vector<8x32xf32>
    %122 = arith.addf %121, %7 : vector<8x32xf32>
    %cst_55 = arith.constant dense<0.000000e+00> : vector<8x32xf32>
    %123 = tpu.matmul %120, %24, %cst_55 {dimension_numbers = #tpu.dot_dimension_numbers<[1], [0], [0], [1], [0, 0, 1, 1], [], []>} : vector<8x32xf32>, vector<32x32xf32>, vector<8x32xf32> -> vector<8x32xf32>
    %124 = arith.addf %122, %123 : vector<8x32xf32>
    %125 = arith.negf %124 : vector<8x32xf32>
    %126 = math.exp %125 : vector<8x32xf32>
    %cst_56 = arith.constant 1.000000e+00 : f32
    %127 = vector.broadcast %cst_56 : f32 to vector<8x32xf32>
    %128 = arith.addf %127, %126 : vector<8x32xf32>
    %129 = arith.divf %127, %128 : vector<8x32xf32>
    %130 = vector.extract_strided_slice %21 {offsets = [24, 0], sizes = [8, 32], strides = [1, 1]} : vector<64x32xf32> to vector<8x32xf32>
    %131 = arith.addf %130, %12 : vector<8x32xf32>
    %cst_57 = arith.constant dense<0.000000e+00> : vector<8x32xf32>
    %132 = tpu.matmul %120, %25, %cst_57 {dimension_numbers = #tpu.dot_dimension_numbers<[1], [0], [0], [1], [0, 0, 1, 1], [], []>} : vector<8x32xf32>, vector<32x32xf32>, vector<8x32xf32> -> vector<8x32xf32>
    %133 = arith.addf %131, %132 : vector<8x32xf32>
    %134 = arith.negf %133 : vector<8x32xf32>
    %135 = math.exp %134 : vector<8x32xf32>
    %cst_58 = arith.constant 1.000000e+00 : f32
    %136 = vector.broadcast %cst_58 : f32 to vector<8x32xf32>
    %137 = arith.addf %136, %135 : vector<8x32xf32>
    %138 = arith.divf %136, %137 : vector<8x32xf32>
    %139 = vector.extract_strided_slice %23 {offsets = [24, 0], sizes = [8, 32], strides = [1, 1]} : vector<64x32xf32> to vector<8x32xf32>
    %140 = arith.addf %139, %17 : vector<8x32xf32>
    %cst_59 = arith.constant dense<0.000000e+00> : vector<8x32xf32>
    %141 = tpu.matmul %120, %26, %cst_59 {dimension_numbers = #tpu.dot_dimension_numbers<[1], [0], [0], [1], [0, 0, 1, 1], [], []>} : vector<8x32xf32>, vector<32x32xf32>, vector<8x32xf32> -> vector<8x32xf32>
    %142 = arith.addf %141, %29 : vector<8x32xf32>
    %143 = arith.mulf %129, %142 : vector<8x32xf32>
    %144 = arith.addf %140, %143 : vector<8x32xf32>
    %145 = math.tanh %144 : vector<8x32xf32>
    %cst_60 = arith.constant 1.000000e+00 : f32
    %146 = vector.broadcast %cst_60 : f32 to vector<8x32xf32>
    %147 = arith.subf %146, %138 : vector<8x32xf32>
    %148 = arith.mulf %147, %145 : vector<8x32xf32>
    %149 = arith.mulf %138, %120 : vector<8x32xf32>
    %150 = arith.addf %148, %149 : vector<8x32xf32>
    %151 = vector.extract_strided_slice %19 {offsets = [32, 0], sizes = [8, 32], strides = [1, 1]} : vector<64x32xf32> to vector<8x32xf32>
    %152 = arith.addf %151, %7 : vector<8x32xf32>
    %cst_61 = arith.constant dense<0.000000e+00> : vector<8x32xf32>
    %153 = tpu.matmul %150, %24, %cst_61 {dimension_numbers = #tpu.dot_dimension_numbers<[1], [0], [0], [1], [0, 0, 1, 1], [], []>} : vector<8x32xf32>, vector<32x32xf32>, vector<8x32xf32> -> vector<8x32xf32>
    %154 = arith.addf %152, %153 : vector<8x32xf32>
    %155 = arith.negf %154 : vector<8x32xf32>
    %156 = math.exp %155 : vector<8x32xf32>
    %cst_62 = arith.constant 1.000000e+00 : f32
    %157 = vector.broadcast %cst_62 : f32 to vector<8x32xf32>
    %158 = arith.addf %157, %156 : vector<8x32xf32>
    %159 = arith.divf %157, %158 : vector<8x32xf32>
    %160 = vector.extract_strided_slice %21 {offsets = [32, 0], sizes = [8, 32], strides = [1, 1]} : vector<64x32xf32> to vector<8x32xf32>
    %161 = arith.addf %160, %12 : vector<8x32xf32>
    %cst_63 = arith.constant dense<0.000000e+00> : vector<8x32xf32>
    %162 = tpu.matmul %150, %25, %cst_63 {dimension_numbers = #tpu.dot_dimension_numbers<[1], [0], [0], [1], [0, 0, 1, 1], [], []>} : vector<8x32xf32>, vector<32x32xf32>, vector<8x32xf32> -> vector<8x32xf32>
    %163 = arith.addf %161, %162 : vector<8x32xf32>
    %164 = arith.negf %163 : vector<8x32xf32>
    %165 = math.exp %164 : vector<8x32xf32>
    %cst_64 = arith.constant 1.000000e+00 : f32
    %166 = vector.broadcast %cst_64 : f32 to vector<8x32xf32>
    %167 = arith.addf %166, %165 : vector<8x32xf32>
    %168 = arith.divf %166, %167 : vector<8x32xf32>
    %169 = vector.extract_strided_slice %23 {offsets = [32, 0], sizes = [8, 32], strides = [1, 1]} : vector<64x32xf32> to vector<8x32xf32>
    %170 = arith.addf %169, %17 : vector<8x32xf32>
    %cst_65 = arith.constant dense<0.000000e+00> : vector<8x32xf32>
    %171 = tpu.matmul %150, %26, %cst_65 {dimension_numbers = #tpu.dot_dimension_numbers<[1], [0], [0], [1], [0, 0, 1, 1], [], []>} : vector<8x32xf32>, vector<32x32xf32>, vector<8x32xf32> -> vector<8x32xf32>
    %172 = arith.addf %171, %29 : vector<8x32xf32>
    %173 = arith.mulf %159, %172 : vector<8x32xf32>
    %174 = arith.addf %170, %173 : vector<8x32xf32>
    %175 = math.tanh %174 : vector<8x32xf32>
    %cst_66 = arith.constant 1.000000e+00 : f32
    %176 = vector.broadcast %cst_66 : f32 to vector<8x32xf32>
    %177 = arith.subf %176, %168 : vector<8x32xf32>
    %178 = arith.mulf %177, %175 : vector<8x32xf32>
    %179 = arith.mulf %168, %150 : vector<8x32xf32>
    %180 = arith.addf %178, %179 : vector<8x32xf32>
    %181 = vector.extract_strided_slice %19 {offsets = [40, 0], sizes = [8, 32], strides = [1, 1]} : vector<64x32xf32> to vector<8x32xf32>
    %182 = arith.addf %181, %7 : vector<8x32xf32>
    %cst_67 = arith.constant dense<0.000000e+00> : vector<8x32xf32>
    %183 = tpu.matmul %180, %24, %cst_67 {dimension_numbers = #tpu.dot_dimension_numbers<[1], [0], [0], [1], [0, 0, 1, 1], [], []>} : vector<8x32xf32>, vector<32x32xf32>, vector<8x32xf32> -> vector<8x32xf32>
    %184 = arith.addf %182, %183 : vector<8x32xf32>
    %185 = arith.negf %184 : vector<8x32xf32>
    %186 = math.exp %185 : vector<8x32xf32>
    %cst_68 = arith.constant 1.000000e+00 : f32
    %187 = vector.broadcast %cst_68 : f32 to vector<8x32xf32>
    %188 = arith.addf %187, %186 : vector<8x32xf32>
    %189 = arith.divf %187, %188 : vector<8x32xf32>
    %190 = vector.extract_strided_slice %21 {offsets = [40, 0], sizes = [8, 32], strides = [1, 1]} : vector<64x32xf32> to vector<8x32xf32>
    %191 = arith.addf %190, %12 : vector<8x32xf32>
    %cst_69 = arith.constant dense<0.000000e+00> : vector<8x32xf32>
    %192 = tpu.matmul %180, %25, %cst_69 {dimension_numbers = #tpu.dot_dimension_numbers<[1], [0], [0], [1], [0, 0, 1, 1], [], []>} : vector<8x32xf32>, vector<32x32xf32>, vector<8x32xf32> -> vector<8x32xf32>
    %193 = arith.addf %191, %192 : vector<8x32xf32>
    %194 = arith.negf %193 : vector<8x32xf32>
    %195 = math.exp %194 : vector<8x32xf32>
    %cst_70 = arith.constant 1.000000e+00 : f32
    %196 = vector.broadcast %cst_70 : f32 to vector<8x32xf32>
    %197 = arith.addf %196, %195 : vector<8x32xf32>
    %198 = arith.divf %196, %197 : vector<8x32xf32>
    %199 = vector.extract_strided_slice %23 {offsets = [40, 0], sizes = [8, 32], strides = [1, 1]} : vector<64x32xf32> to vector<8x32xf32>
    %200 = arith.addf %199, %17 : vector<8x32xf32>
    %cst_71 = arith.constant dense<0.000000e+00> : vector<8x32xf32>
    %201 = tpu.matmul %180, %26, %cst_71 {dimension_numbers = #tpu.dot_dimension_numbers<[1], [0], [0], [1], [0, 0, 1, 1], [], []>} : vector<8x32xf32>, vector<32x32xf32>, vector<8x32xf32> -> vector<8x32xf32>
    %202 = arith.addf %201, %29 : vector<8x32xf32>
    %203 = arith.mulf %189, %202 : vector<8x32xf32>
    %204 = arith.addf %200, %203 : vector<8x32xf32>
    %205 = math.tanh %204 : vector<8x32xf32>
    %cst_72 = arith.constant 1.000000e+00 : f32
    %206 = vector.broadcast %cst_72 : f32 to vector<8x32xf32>
    %207 = arith.subf %206, %198 : vector<8x32xf32>
    %208 = arith.mulf %207, %205 : vector<8x32xf32>
    %209 = arith.mulf %198, %180 : vector<8x32xf32>
    %210 = arith.addf %208, %209 : vector<8x32xf32>
    %211 = vector.extract_strided_slice %19 {offsets = [48, 0], sizes = [8, 32], strides = [1, 1]} : vector<64x32xf32> to vector<8x32xf32>
    %212 = arith.addf %211, %7 : vector<8x32xf32>
    %cst_73 = arith.constant dense<0.000000e+00> : vector<8x32xf32>
    %213 = tpu.matmul %210, %24, %cst_73 {dimension_numbers = #tpu.dot_dimension_numbers<[1], [0], [0], [1], [0, 0, 1, 1], [], []>} : vector<8x32xf32>, vector<32x32xf32>, vector<8x32xf32> -> vector<8x32xf32>
    %214 = arith.addf %212, %213 : vector<8x32xf32>
    %215 = arith.negf %214 : vector<8x32xf32>
    %216 = math.exp %215 : vector<8x32xf32>
    %cst_74 = arith.constant 1.000000e+00 : f32
    %217 = vector.broadcast %cst_74 : f32 to vector<8x32xf32>
    %218 = arith.addf %217, %216 : vector<8x32xf32>
    %219 = arith.divf %217, %218 : vector<8x32xf32>
    %220 = vector.extract_strided_slice %21 {offsets = [48, 0], sizes = [8, 32], strides = [1, 1]} : vector<64x32xf32> to vector<8x32xf32>
    %221 = arith.addf %220, %12 : vector<8x32xf32>
    %cst_75 = arith.constant dense<0.000000e+00> : vector<8x32xf32>
    %222 = tpu.matmul %210, %25, %cst_75 {dimension_numbers = #tpu.dot_dimension_numbers<[1], [0], [0], [1], [0, 0, 1, 1], [], []>} : vector<8x32xf32>, vector<32x32xf32>, vector<8x32xf32> -> vector<8x32xf32>
    %223 = arith.addf %221, %222 : vector<8x32xf32>
    %224 = arith.negf %223 : vector<8x32xf32>
    %225 = math.exp %224 : vector<8x32xf32>
    %cst_76 = arith.constant 1.000000e+00 : f32
    %226 = vector.broadcast %cst_76 : f32 to vector<8x32xf32>
    %227 = arith.addf %226, %225 : vector<8x32xf32>
    %228 = arith.divf %226, %227 : vector<8x32xf32>
    %229 = vector.extract_strided_slice %23 {offsets = [48, 0], sizes = [8, 32], strides = [1, 1]} : vector<64x32xf32> to vector<8x32xf32>
    %230 = arith.addf %229, %17 : vector<8x32xf32>
    %cst_77 = arith.constant dense<0.000000e+00> : vector<8x32xf32>
    %231 = tpu.matmul %210, %26, %cst_77 {dimension_numbers = #tpu.dot_dimension_numbers<[1], [0], [0], [1], [0, 0, 1, 1], [], []>} : vector<8x32xf32>, vector<32x32xf32>, vector<8x32xf32> -> vector<8x32xf32>
    %232 = arith.addf %231, %29 : vector<8x32xf32>
    %233 = arith.mulf %219, %232 : vector<8x32xf32>
    %234 = arith.addf %230, %233 : vector<8x32xf32>
    %235 = math.tanh %234 : vector<8x32xf32>
    %cst_78 = arith.constant 1.000000e+00 : f32
    %236 = vector.broadcast %cst_78 : f32 to vector<8x32xf32>
    %237 = arith.subf %236, %228 : vector<8x32xf32>
    %238 = arith.mulf %237, %235 : vector<8x32xf32>
    %239 = arith.mulf %228, %210 : vector<8x32xf32>
    %240 = arith.addf %238, %239 : vector<8x32xf32>
    %241 = vector.extract_strided_slice %19 {offsets = [56, 0], sizes = [8, 32], strides = [1, 1]} : vector<64x32xf32> to vector<8x32xf32>
    %242 = arith.addf %241, %7 : vector<8x32xf32>
    %cst_79 = arith.constant dense<0.000000e+00> : vector<8x32xf32>
    %243 = tpu.matmul %240, %24, %cst_79 {dimension_numbers = #tpu.dot_dimension_numbers<[1], [0], [0], [1], [0, 0, 1, 1], [], []>} : vector<8x32xf32>, vector<32x32xf32>, vector<8x32xf32> -> vector<8x32xf32>
    %244 = arith.addf %242, %243 : vector<8x32xf32>
    %245 = arith.negf %244 : vector<8x32xf32>
    %246 = math.exp %245 : vector<8x32xf32>
    %cst_80 = arith.constant 1.000000e+00 : f32
    %247 = vector.broadcast %cst_80 : f32 to vector<8x32xf32>
    %248 = arith.addf %247, %246 : vector<8x32xf32>
    %249 = arith.divf %247, %248 : vector<8x32xf32>
    %250 = vector.extract_strided_slice %21 {offsets = [56, 0], sizes = [8, 32], strides = [1, 1]} : vector<64x32xf32> to vector<8x32xf32>
    %251 = arith.addf %250, %12 : vector<8x32xf32>
    %cst_81 = arith.constant dense<0.000000e+00> : vector<8x32xf32>
    %252 = tpu.matmul %240, %25, %cst_81 {dimension_numbers = #tpu.dot_dimension_numbers<[1], [0], [0], [1], [0, 0, 1, 1], [], []>} : vector<8x32xf32>, vector<32x32xf32>, vector<8x32xf32> -> vector<8x32xf32>
    %253 = arith.addf %251, %252 : vector<8x32xf32>
    %254 = arith.negf %253 : vector<8x32xf32>
    %255 = math.exp %254 : vector<8x32xf32>
    %cst_82 = arith.constant 1.000000e+00 : f32
    %256 = vector.broadcast %cst_82 : f32 to vector<8x32xf32>
    %257 = arith.addf %256, %255 : vector<8x32xf32>
    %258 = arith.divf %256, %257 : vector<8x32xf32>
    %259 = vector.extract_strided_slice %23 {offsets = [56, 0], sizes = [8, 32], strides = [1, 1]} : vector<64x32xf32> to vector<8x32xf32>
    %260 = arith.addf %259, %17 : vector<8x32xf32>
    %cst_83 = arith.constant dense<0.000000e+00> : vector<8x32xf32>
    %261 = tpu.matmul %240, %26, %cst_83 {dimension_numbers = #tpu.dot_dimension_numbers<[1], [0], [0], [1], [0, 0, 1, 1], [], []>} : vector<8x32xf32>, vector<32x32xf32>, vector<8x32xf32> -> vector<8x32xf32>
    %262 = arith.addf %261, %29 : vector<8x32xf32>
    %263 = arith.mulf %249, %262 : vector<8x32xf32>
    %264 = arith.addf %260, %263 : vector<8x32xf32>
    %265 = math.tanh %264 : vector<8x32xf32>
    %cst_84 = arith.constant 1.000000e+00 : f32
    %266 = vector.broadcast %cst_84 : f32 to vector<8x32xf32>
    %267 = arith.subf %266, %258 : vector<8x32xf32>
    %268 = arith.mulf %267, %265 : vector<8x32xf32>
    %269 = arith.mulf %258, %240 : vector<8x32xf32>
    %270 = arith.addf %268, %269 : vector<8x32xf32>
    %c0_85 = arith.constant 0 : index
    %c0_86 = arith.constant 0 : index
    %271 = vector.load %arg16[%c0_85, %c0_86] : memref<32x128xf32, #tpu.memory_space<vmem>>, vector<32x128xf32>
    %cst_87 = arith.constant dense<0.000000e+00> : vector<8x128xf32>
    %272 = tpu.matmul %0, %271, %cst_87 {dimension_numbers = #tpu.dot_dimension_numbers<[1], [0], [0], [1], [0, 0, 1, 1], [], []>} : vector<8x32xf32>, vector<32x128xf32>, vector<8x128xf32> -> vector<8x128xf32>
    %c0_88 = arith.constant 0 : index
    %c0_89 = arith.constant 0 : index
    %273 = vector.load %arg17[%c0_88, %c0_89] : memref<32x128xf32, #tpu.memory_space<vmem>>, vector<32x128xf32>
    %cst_90 = arith.constant dense<0.000000e+00> : vector<8x128xf32>
    %274 = tpu.matmul %1, %273, %cst_90 {dimension_numbers = #tpu.dot_dimension_numbers<[1], [0], [0], [1], [0, 0, 1, 1], [], []>} : vector<8x32xf32>, vector<32x128xf32>, vector<8x128xf32> -> vector<8x128xf32>
    %275 = arith.addf %272, %274 : vector<8x128xf32>
    %c0_91 = arith.constant 0 : index
    %c0_92 = arith.constant 0 : index
    %276 = vector.load %arg18[%c0_91, %c0_92] : memref<32x128xf32, #tpu.memory_space<vmem>>, vector<32x128xf32>
    %cst_93 = arith.constant dense<0.000000e+00> : vector<8x128xf32>
    %277 = tpu.matmul %270, %276, %cst_93 {dimension_numbers = #tpu.dot_dimension_numbers<[1], [0], [0], [1], [0, 0, 1, 1], [], []>} : vector<8x32xf32>, vector<32x128xf32>, vector<8x128xf32> -> vector<8x128xf32>
    %278 = arith.addf %275, %277 : vector<8x128xf32>
    %c0_94 = arith.constant 0 : index
    %c0_95 = arith.constant 0 : index
    %279 = vector.load %arg19[%c0_94, %c0_95] : memref<1x128xf32, #tpu.memory_space<vmem>>, vector<1x128xf32>
    %280 = vector.broadcast %279 : vector<1x128xf32> to vector<8x128xf32>
    %281 = arith.addf %278, %280 : vector<8x128xf32>
    %c0_96 = arith.constant 0 : index
    %c0_97 = arith.constant 0 : index
    %282 = vector.load %arg20[%c0_96, %c0_97] : memref<32x16xf32, #tpu.memory_space<vmem>>, vector<32x16xf32>
    %cst_98 = arith.constant dense<0.000000e+00> : vector<8x16xf32>
    %283 = tpu.matmul %0, %282, %cst_98 {dimension_numbers = #tpu.dot_dimension_numbers<[1], [0], [0], [1], [0, 0, 1, 1], [], []>} : vector<8x32xf32>, vector<32x16xf32>, vector<8x16xf32> -> vector<8x16xf32>
    %c0_99 = arith.constant 0 : index
    %c0_100 = arith.constant 0 : index
    %284 = vector.load %arg21[%c0_99, %c0_100] : memref<32x16xf32, #tpu.memory_space<vmem>>, vector<32x16xf32>
    %cst_101 = arith.constant dense<0.000000e+00> : vector<8x16xf32>
    %285 = tpu.matmul %270, %284, %cst_101 {dimension_numbers = #tpu.dot_dimension_numbers<[1], [0], [0], [1], [0, 0, 1, 1], [], []>} : vector<8x32xf32>, vector<32x16xf32>, vector<8x16xf32> -> vector<8x16xf32>
    %286 = arith.addf %283, %285 : vector<8x16xf32>
    %c0_102 = arith.constant 0 : index
    %c0_103 = arith.constant 0 : index
    %287 = vector.load %arg22[%c0_102, %c0_103] : memref<1x16xf32, #tpu.memory_space<vmem>>, vector<1x16xf32>
    %288 = vector.broadcast %287 : vector<1x16xf32> to vector<8x16xf32>
    %289 = arith.addf %286, %288 : vector<8x16xf32>
    %c0_104 = arith.constant 0 : index
    %c0_105 = arith.constant 0 : index
    %290 = vector.load %arg23[%c0_104, %c0_105] : memref<8x1xi32, #tpu.memory_space<vmem>>, vector<8x1xi32>
    %cst_106 = arith.constant dense<0xFF800000> : vector<8xf32>
    %291 = vector.multi_reduction <maximumf>, %281, %cst_106 [1] : vector<8x128xf32> to vector<8xf32>
    %292 = vector.shape_cast %291 : vector<8xf32> to vector<8x1xf32>
    %293 = vector.broadcast %292 : vector<8x1xf32> to vector<8x128xf32>
    %294 = arith.subf %281, %293 : vector<8x128xf32>
    %295 = math.exp %294 : vector<8x128xf32>
    %cst_107 = arith.constant dense<0.000000e+00> : vector<8xf32>
    %296 = vector.multi_reduction <add>, %295, %cst_107 [1] : vector<8x128xf32> to vector<8xf32>
    %297 = vector.shape_cast %296 : vector<8xf32> to vector<8x1xf32>
    %298 = math.log %297 : vector<8x1xf32>
    %299 = arith.addf %292, %298 : vector<8x1xf32>
    %300 = tpu.iota {dimensions = array<i32: 1>} : vector<8x128xi32>
    %301 = vector.broadcast %290 : vector<8x1xi32> to vector<8x128xi32>
    %302 = arith.cmpi eq, %300, %301 : vector<8x128xi32>
    %cst_108 = arith.constant 0.000000e+00 : f32
    %303 = vector.broadcast %cst_108 : f32 to vector<8x128xf32>
    %304 = arith.select %302, %281, %303 : vector<8x128xi1>, vector<8x128xf32>
    %cst_109 = arith.constant dense<0.000000e+00> : vector<8xf32>
    %305 = vector.multi_reduction <add>, %304, %cst_109 [1] : vector<8x128xf32> to vector<8xf32>
    %306 = vector.shape_cast %305 : vector<8xf32> to vector<8x1xf32>
    %307 = arith.subf %299, %306 : vector<8x1xf32>
    %308 = vector.shape_cast %307 : vector<8x1xf32> to vector<1x8x1xf32>
    %cst_110 = arith.constant dense<0.000000e+00> : vector<1xf32>
    %309 = vector.multi_reduction <add>, %308, %cst_110 [1, 2] : vector<1x8x1xf32> to vector<1xf32>
    %310 = vector.shape_cast %309 : vector<1xf32> to vector<1x1x1xf32>
    %311 = vector.extract %310[0, 0, 0] : f32 from vector<1x1x1xf32>
    %cst_111 = arith.constant 8.000000e+00 : f32
    %312 = arith.divf %311, %cst_111 : f32
    %c0_112 = arith.constant 0 : index
    %c0_113 = arith.constant 0 : index
    %313 = vector.load %arg24[%c0_112, %c0_113] : memref<8x1xi32, #tpu.memory_space<vmem>>, vector<8x1xi32>
    %cst_114 = arith.constant dense<0xFF800000> : vector<8xf32>
    %314 = vector.multi_reduction <maximumf>, %289, %cst_114 [1] : vector<8x16xf32> to vector<8xf32>
    %315 = vector.shape_cast %314 : vector<8xf32> to vector<8x1xf32>
    %316 = vector.broadcast %315 : vector<8x1xf32> to vector<8x16xf32>
    %317 = arith.subf %289, %316 : vector<8x16xf32>
    %318 = math.exp %317 : vector<8x16xf32>
    %cst_115 = arith.constant dense<0.000000e+00> : vector<8xf32>
    %319 = vector.multi_reduction <add>, %318, %cst_115 [1] : vector<8x16xf32> to vector<8xf32>
    %320 = vector.shape_cast %319 : vector<8xf32> to vector<8x1xf32>
    %321 = math.log %320 : vector<8x1xf32>
    %322 = arith.addf %315, %321 : vector<8x1xf32>
    %323 = tpu.iota {dimensions = array<i32: 1>} : vector<8x16xi32>
    %324 = vector.broadcast %313 : vector<8x1xi32> to vector<8x16xi32>
    %325 = arith.cmpi eq, %323, %324 : vector<8x16xi32>
    %cst_116 = arith.constant 0.000000e+00 : f32
    %326 = vector.broadcast %cst_116 : f32 to vector<8x16xf32>
    %327 = arith.select %325, %289, %326 : vector<8x16xi1>, vector<8x16xf32>
    %cst_117 = arith.constant dense<0.000000e+00> : vector<8xf32>
    %328 = vector.multi_reduction <add>, %327, %cst_117 [1] : vector<8x16xf32> to vector<8xf32>
    %329 = vector.shape_cast %328 : vector<8xf32> to vector<8x1xf32>
    %330 = arith.subf %322, %329 : vector<8x1xf32>
    %331 = vector.shape_cast %330 : vector<8x1xf32> to vector<1x8x1xf32>
    %cst_118 = arith.constant dense<0.000000e+00> : vector<1xf32>
    %332 = vector.multi_reduction <add>, %331, %cst_118 [1, 2] : vector<1x8x1xf32> to vector<1xf32>
    %333 = vector.shape_cast %332 : vector<1xf32> to vector<1x1x1xf32>
    %334 = vector.extract %333[0, 0, 0] : f32 from vector<1x1x1xf32>
    %cst_119 = arith.constant 8.000000e+00 : f32
    %335 = arith.divf %334, %cst_119 : f32
    %cst_120 = arith.constant 1.000000e-01 : f32
    %336 = arith.mulf %cst_120, %335 : f32
    %337 = arith.addf %312, %336 : f32
    %338 = vector.broadcast %337 : f32 to vector<1x1xf32>
    %c0_121 = arith.constant 0 : index
    %c0_122 = arith.constant 0 : index
    %339 = vector.load %arg25[%c0_121, %c0_122] : memref<1x1xf32, #tpu.memory_space<vmem>>, vector<1x1xf32>
    tpu.vector_store %arg25[%c0_121, %c0_122], %338 {strides = array<i32>} : memref<1x1xf32, #tpu.memory_space<vmem>>, vector<1x1xf32>,
    return
  }
}

</mosaic_0001>

<bundles_post_ra>
// kernel: tpu_custom_call.1
= control target key start
LH: loop header
LB: loop body
LE: loop exit
PB: predicated region body
PF: predicated region fallthrough
CT: control target
= control target key end

     0   :  { %s5071_s0 = inlined_call_operand.hbm [shape: f32[8,32], index: 0, kind: input, shape index: {}]   ;;  %s5072_s1 = inlined_call_operand.hbm [shape: f32[8,32], index: 1, kind: input, shape index: {}]   ;;  %s5073_s2 = inlined_call_operand.vmem [shape: f32[64,32], index: 2, kind: input, shape index: {}]   ;;  %s5074_s3 = inlined_call_operand.vmem [shape: f32[32,32], index: 3, kind: input, shape index: {}]   ;;  %s5075_s4 = inlined_call_operand.vmem [shape: f32[32,32], index: 4, kind: input, shape index: {}]   ;;  %s5076_s5 = inlined_call_operand.vmem [shape: f32[32,32], index: 5, kind: input, shape index: {}]   ;;  %s5077_s6 = inlined_call_operand.vmem [shape: f32[32,32], index: 6, kind: input, shape index: {}]   ;;  %s5078_s7 = inlined_call_operand.vmem [shape: f32[32,32], index: 7, kind: input, shape index: {}]   ;;  %s5079_s8 = inlined_call_operand.vmem [shape: f32[32,32], index: 8, kind: input, shape index: {}]   ;;  %s5080_s9 = inlined_call_operand.hbm [shape: f32[32,32], index: 9, kind: input, shape index: {}]   ;;  %s5081_s10 = inlined_call_operand.hbm [shape: f32[32,32], index: 10, kind: input, shape index: {}]   ;;  %s5082_s11 = inlined_call_operand.hbm [shape: f32[32,32], index: 11, kind: input, shape index: {}]   ;;  %s5083_s12 = inlined_call_operand.vmem [shape: f32[1,32], index: 12, kind: input, shape index: {}]   ;;  %s5084_s13 = inlined_call_operand.hbm [shape: f32[1,32], index: 13, kind: input, shape index: {}]   ;;  %s5085_s14 = inlined_call_operand.hbm [shape: f32[1,32], index: 14, kind: input, shape index: {}]   ;;  %s5086_s15 = inlined_call_operand.hbm [shape: f32[1,32], index: 15, kind: input, shape index: {}]   ;;  %s5087_s16 = inlined_call_operand.hbm [shape: f32[32,128], index: 16, kind: input, shape index: {}]   ;;  %s5088_s17 = inlined_call_operand.hbm [shape: f32[32,128], index: 17, kind: input, shape index: {}]   ;;  %s5089_s18 = inlined_call_operand.hbm [shape: f32[32,128], index: 18, kind: input, shape index: {}]   ;;  %s5090_s19 = inlined_call_operand.vmem [shape: f32[1,128], index: 19, kind: input, shape index: {}]   ;;  %s5091_s20 = inlined_call_operand.vmem [shape: f32[32,16], index: 20, kind: input, shape index: {}]   ;;  %s5092_s21 = inlined_call_operand.vmem [shape: f32[32,16], index: 21, kind: input, shape index: {}]   ;;  %s5093_s22 = inlined_call_operand.vmem [shape: f32[1,16], index: 22, kind: input, shape index: {}]   ;;  %s5094_s23 = inlined_call_operand.vmem [shape: s32[8,1], index: 23, kind: input, shape index: {}]   ;;  %s5095_s24 = inlined_call_operand.vmem [shape: s32[8,1], index: 24, kind: input, shape index: {}]   ;;  %s5096_s25 = inlined_call_operand.hbm [shape: f32[1,1], index: 25, kind: output, shape index: {}]  }
   0x1   :  { %5104 = sst [smem:[#allocation28_spill]] %s5071_s0 }
   0x2   :  { %5105 = sst [smem:[#allocation29_spill]] %s5072_s1 }
   0x3   :  { %5106 = sst [smem:[#allocation30_spill]] %s5073_s2 }
   0x4   :  { %5107 = sst [smem:[#allocation31_spill]] %s5074_s3 }
   0x5   :  { %5108 = sst [smem:[#allocation32_spill]] %s5075_s4 }
   0x6   :  { %5109 = sst [smem:[#allocation33_spill]] %s5076_s5 }
   0x7   :  { %5110 = sst [smem:[#allocation34_spill]] %s5077_s6 }
   0x8   :  { %5111 = sst [smem:[#allocation35_spill]] %s5078_s7 }
   0x9   :  { %5112 = sst [smem:[#allocation36_spill]] %s5079_s8 }
   0xa   :  { %5113 = sst [smem:[#allocation37_spill]] %s5080_s9 }
   0xb   :  { %30 = vsyncpa [#allocation3], 0 }
   0xc   :  { %31 = vsyncpa [#allocation6], 0 }
   0xd   :  { %32 = vsyncpa [#allocation9], 0 }
   0xe   :  { %33 = vsyncpa [#allocation12], 0 }
   0xf   :  { %34 = vsyncpa [#allocation15], 0 }
  0x10   :  { %35 = vsyncpa [#allocation18], 0 }
  0x11   :  { %36 = vsyncpa [#allocation4], 0  ;;  %s4281_s29 = smov [#allocation5]  }
  0x12   :  { %s53_s2 = sshll.u32 %s4281_s29, 4  ;;  %s54_s2 = int_to_ptr.vmem [resolvable:$true] %s53_s2 }
  0x13   :  { %s4035_s6 = scalar_lea.vmem %s54_s2, 128  ;;  %p4040_p1 = scmp.lt.s32.totalorder %s54_s2, %s54_s2 }
  0x14   :  { %p4036_p0 = scmp.ne.s32.totalorder %s54_s2, %s4035_s6  ;;  %p4041_p2 = scmp.lt.s32.totalorder %s4035_s6, %s4035_s6 }
  0x16   :  { %p4042_p3 = por %p4041_p2, %p4040_p1 }
  0x18   :  { %p4043_p4 = pnand %p4042_p3, %p4036_p0 }
  0x1a   :  { %4046 = shalt.err (!%p4043_p4)
}
  0x1b   :  { %s5114_s3 = sld [smem:[#allocation29_spill]]  ;;  %s4282_s26 = smov [#allocation8]  }
  0x1c   :  { %s88_s1 = sshll.u32 %s4282_s26, 4  ;;  %s4283_s8 = smov [#allocation11]   ;;  %s89_s1 = int_to_ptr.vmem [resolvable:$true] %s88_s1 }
  0x1d   :  { %s115_s27 = sshll.u32 %s4283_s8, 4  ;;  %s4055_s4 = scalar_lea.vmem %s89_s1, 512  ;;  %s116_s27 = int_to_ptr.vmem [resolvable:$true] %s115_s27 }
  0x1e   :  { %p4056_p5 = scmp.ne.s32.totalorder %s89_s1, %s4055_s4  ;;  %p4060_p6 = scmp.lt.s32.totalorder %s89_s1, %s89_s1 }
  0x1f   :  { %p4061_p7 = scmp.lt.s32.totalorder %s4055_s4, %s4055_s4 }
  0x21   :  { %56 = dma.hbm_to_vmem [thread:$0]  %s5114_s3, 128, %s54_s2, [#allocation6]  }
  0x22   :  { %p4062_p8 = por %p4061_p7, %p4060_p6 }
  0x24   :  { %p4063_p9 = pnand %p4062_p8, %p4056_p5 }
  0x26   :  { %4066 = shalt.err (!%p4063_p9)
}
  0x27   :  { %s4284_s28 = smov 128   ;;  %s4285_s9 = smov 8  }
  0x28   :  { %94 = dma.hbm_to_vmem [thread:$0]  %s5081_s10, 512, %s89_s1, [#allocation9], %s4284_s28, %s4284_s28, %s4285_s9  }
  0x29   :  { %s4075_s29 = scalar_lea.vmem %s116_s27, 16  ;;  %s4079_s2 = scalar_lea.vmem %s116_s27, 32 }
  0x2a   :  { %p4076_p10 = scmp.ne.s32.totalorder %s116_s27, %s4075_s29  ;;  %p4080_p11 = scmp.lt.s32.totalorder %s116_s27, %s116_s27 }
  0x2b   :  { %p4081_p12 = scmp.lt.s32.totalorder %s4079_s2, %s4075_s29 }
  0x2d   :  { %p4082_p13 = por %p4081_p12, %p4080_p11 }
  0x2f   :  { %p4083_p0 = pnand %p4082_p13, %p4076_p10 }
  0x31   :  { %4086 = shalt.err (!%p4083_p0)
}
  0x32   :  { %118 = dma.hbm_to_vmem [thread:$0]  %s5084_s13, 16, %s116_s27, [#allocation12]  }
  0x33   :  { %s4286_s7 = smov [#allocation14]   ;;  %s4287_s26 = smov [#allocation17]  }
  0x34   :  { %s135_s3 = sshll.u32 %s4286_s7, 4  ;;  %s156_s8 = sshll.u32 %s4287_s26, 4  ;;  %s136_s3 = int_to_ptr.vmem [resolvable:$true] %s135_s3  ;;  %s157_s8 = int_to_ptr.vmem [resolvable:$true] %s156_s8 }
  0x35   :  { %s4095_s4 = scalar_lea.vmem %s136_s3, 16  ;;  %s4099_s10 = scalar_lea.vmem %s136_s3, 32 }
  0x36   :  { %p4096_p1 = scmp.ne.s32.totalorder %s136_s3, %s4095_s4  ;;  %p4100_p2 = scmp.lt.s32.totalorder %s136_s3, %s136_s3 }
  0x37   :  { %p4101_p3 = scmp.lt.s32.totalorder %s4099_s10, %s4095_s4 }
  0x39   :  { %p4102_p4 = por %p4101_p3, %p4100_p2 }
  0x3b   :  { %p4103_p5 = pnand %p4102_p4, %p4096_p1 }
  0x3d   :  { %4106 = shalt.err (!%p4103_p5)
}
  0x3e   :  { %138 = dma.hbm_to_vmem [thread:$0]  %s5086_s15, 16, %s136_s3, [#allocation15]  }
  0x3f   :  { %s4115_s0 = scalar_lea.vmem %s157_s8, 512  ;;  %p4120_p7 = scmp.lt.s32.totalorder %s157_s8, %s157_s8 }
  0x40   :  { %p4116_p6 = scmp.ne.s32.totalorder %s157_s8, %s4115_s0  ;;  %p4121_p8 = scmp.lt.s32.totalorder %s4115_s0, %s4115_s0 }
  0x42   :  { %p4122_p9 = por %p4121_p8, %p4120_p7 }
  0x44   :  { %p4123_p10 = pnand %p4122_p9, %p4116_p6 }
  0x46   :  { %4126 = shalt.err (!%p4123_p10)
}
  0x47   :  { %162 = dma.hbm_to_vmem [thread:$0]  %s5088_s17, 512, %s157_s8, [#allocation18], %s4284_s28, %s4284_s28, %s4285_s9  }
  0x48   :  { %s4288_s29 = smov [#allocation2]   ;;  %s4289_s6 = smov [#allocation7]  }
  0x49   :  { %s43_s2 = sshll.u32 %s4288_s29, 4  ;;  %s76_s15 = sshll.u32 %s4289_s6, 4  ;;  %s44_s2 = int_to_ptr.vmem [resolvable:$true] %s43_s2  ;;  %s77_s15 = int_to_ptr.vmem [resolvable:$true] %s76_s15 }
  0x4a   :  { %s4135_s30 = scalar_lea.vmem %s44_s2, 128  ;;  %p4140_p12 = scmp.lt.s32.totalorder %s44_s2, %s44_s2 }
  0x4b   :  { %p4136_p11 = scmp.ne.s32.totalorder %s44_s2, %s4135_s30  ;;  %p4141_p13 = scmp.lt.s32.totalorder %s4135_s30, %s4135_s30 }
  0x4d   :  { %p4142_p0 = por %p4141_p13, %p4140_p12 }
  0x4f   :  { %p4143_p1 = pnand %p4142_p0, %p4136_p11 }
  0x51   :  { %4146 = shalt.err (!%p4143_p1)
}
  0x52   :  { %s5115_s26 = sld [smem:[#allocation28_spill]]  ;;  %s4155_s4 = scalar_lea.vmem %s77_s15, 512 }
  0x53   :  { %p4156_p2 = scmp.ne.s32.totalorder %s77_s15, %s4155_s4  ;;  %p4160_p3 = scmp.lt.s32.totalorder %s77_s15, %s77_s15 }
  0x54   :  { %p4161_p4 = scmp.lt.s32.totalorder %s4155_s4, %s4155_s4 }
  0x56   :  { %p4162_p5 = por %p4161_p4, %p4160_p3 }
  0x58   :  { %46 = dma.hbm_to_vmem [thread:$0]  %s5115_s26, 128, %s44_s2, [#allocation3]  }
  0x59   :  { %p4163_p6 = pnand %p4162_p5, %p4156_p2 }
  0x5b   :  { %4166 = shalt.err (!%p4163_p6)
}
  0x5c   :  { %s5116_s10 = sld [smem:[#allocation37_spill]]  ;;  %s4290_s1 = smov [#allocation10]  }
  0x5d   :  { %s100_s5 = sshll.u32 %s4290_s1, 4  ;;  %s4291_s0 = smov [#allocation13]   ;;  %s101_s5 = int_to_ptr.vmem [resolvable:$true] %s100_s5 }
  0x5e   :  { %s125_s13 = sshll.u32 %s4291_s0, 4  ;;  %s4175_s27 = scalar_lea.vmem %s101_s5, 512  ;;  %s126_s13 = int_to_ptr.vmem [resolvable:$true] %s125_s13 }
  0x5f   :  { %p4176_p7 = scmp.ne.s32.totalorder %s101_s5, %s4175_s27  ;;  %p4180_p8 = scmp.lt.s32.totalorder %s101_s5, %s101_s5 }
  0x60   :  { %p4181_p9 = scmp.lt.s32.totalorder %s4175_s27, %s4175_s27 }
  0x62   :  { %82 = dma.hbm_to_vmem [thread:$0]  %s5116_s10, 512, %s77_s15, [#allocation6], %s4284_s28, %s4284_s28, %s4285_s9  }
  0x63   :  { %p4182_p10 = por %p4181_p9, %p4180_p8 }
  0x65   :  { %p4183_p11 = pnand %p4182_p10, %p4176_p7 }
  0x67   :  { %4186 = shalt.err (!%p4183_p11)
}
  0x68   :  { %106 = dma.hbm_to_vmem [thread:$0]  %s5082_s11, 512, %s101_s5, [#allocation9], %s4284_s28, %s4284_s28, %s4285_s9  }
  0x69   :  { %s4195_s6 = scalar_lea.vmem %s126_s13, 16  ;;  %s4199_s15 = scalar_lea.vmem %s126_s13, 32 }
  0x6a   :  { %p4196_p12 = scmp.ne.s32.totalorder %s126_s13, %s4195_s6  ;;  %p4200_p13 = scmp.lt.s32.totalorder %s126_s13, %s126_s13 }
  0x6b   :  { %p4201_p0 = scmp.lt.s32.totalorder %s4199_s15, %s4195_s6 }
  0x6d   :  { %p4202_p1 = por %p4201_p0, %p4200_p13 }
  0x6f   :  { %p4203_p2 = pnand %p4202_p1, %p4196_p12 }
  0x71   :  { %4206 = shalt.err (!%p4203_p2)
}
  0x72   :  { %128 = dma.hbm_to_vmem [thread:$0]  %s5085_s14, 16, %s126_s13, [#allocation12]  }
  0x73   :  { %s4292_s3 = smov [#allocation16]   ;;  %s4293_s4 = smov [#allocation19]  }
  0x74   :  { %s144_s26 = sshll.u32 %s4292_s3, 4  ;;  %s168_s17 = sshll.u32 %s4293_s4, 4  ;;  %s145_s26 = int_to_ptr.vmem [resolvable:$true] %s144_s26  ;;  %s169_s17 = int_to_ptr.vmem [resolvable:$true] %s168_s17 }
  0x75   :  { %s4215_s8 = scalar_lea.vmem %s145_s26, 512  ;;  %p4220_p4 = scmp.lt.s32.totalorder %s145_s26, %s145_s26 }
  0x76   :  { %p4216_p3 = scmp.ne.s32.totalorder %s145_s26, %s4215_s8  ;;  %p4221_p5 = scmp.lt.s32.totalorder %s4215_s8, %s4215_s8 }
  0x78   :  { %p4222_p6 = por %p4221_p5, %p4220_p4 }
  0x7a   :  { %p4223_p7 = pnand %p4222_p6, %p4216_p3 }
  0x7c   :  { %4226 = shalt.err (!%p4223_p7)
}
  0x7d   :  { %150 = dma.hbm_to_vmem [thread:$0]  %s5087_s16, 512, %s145_s26, [#allocation15], %s4284_s28, %s4284_s28, %s4285_s9  }
  0x7e   :  { %s4235_s14 = scalar_lea.vmem %s169_s17, 512  ;;  %p4240_p9 = scmp.lt.s32.totalorder %s169_s17, %s169_s17 }
  0x7f   :  { %p4236_p8 = scmp.ne.s32.totalorder %s169_s17, %s4235_s14  ;;  %p4241_p10 = scmp.lt.s32.totalorder %s4235_s14, %s4235_s14 }
  0x81   :  { %p4242_p11 = por %p4241_p10, %p4240_p9 }
  0x83   :  { %p4243_p12 = pnand %p4242_p11, %p4236_p8 }
  0x85   :  { %4246 = shalt.err (!%p4243_p12)
}
  0x86   :  { %174 = dma.hbm_to_vmem [thread:$0]  %s5089_s18, 512, %s169_s17, [#allocation18], %s4284_s28, %s4284_s28, %s4285_s9  }
  0x87   :  { %4267 = dma.done.wait [#allocation3], 128  }
  0x88   :  { %4268 = vsyncadd [#allocation3], 4294967168 }
  0x89   :  { %4269 = dma.done.wait [#allocation6], 640  }
  0x8a   :  { %4270 = vsyncadd [#allocation6], 4294966656 }
  0x8b   :  { %4271 = dma.done.wait [#allocation9], 1024  }
  0x8c   :  { %4272 = vsyncadd [#allocation9], 4294966272 }
  0x8d   :  { %4273 = dma.done.wait [#allocation12], 32  }
  0x8e   :  { %4274 = vsyncadd [#allocation12], 4294967264 }
  0x8f   :  { %4275 = dma.done.wait [#allocation15], 528  }
  0x90   :  { %4276 = vsyncadd [#allocation15], 4294966768 }
  0x91   :  { %4277 = dma.done.wait [#allocation18], 1024  }
  0x92   :  { %4278 = vsyncadd [#allocation18], 4294966272  ;;  %v4294_v0 = vmov 0.0   ;;  %vm4295_vm0 = vmmov 0   ;;  %s5117_s28 = sld [smem:[#allocation34_spill]]  ;;  %v221_v9 = vld [vmem:[#allocation5] sm:$0xff] }
  0x93   :  { %3503 = vmatprep.subr.mxu0 %v4294_v0  ;;  %3514 = vmatprep.subr.mxu1 %v4294_v0  ;;  %s5118_s13 = sld [smem:[#allocation35_spill]]  ;;  %vm241_vm1 = vcmask 261120   ;;  %v4590_v30 = vld [vmem:[#allocation7 + $0x18] sm:$0xff]  ;;  %v4607_v34 = vld [vmem:[#allocation7 + $0x10] sm:$0xff]  ;;  %v4618_v36 = vld [vmem:[#allocation7 + $0x8] sm:$0xff]  ;;  %vm3172_vm2 = vcmask 130048  }
  0x94   :  { %3511 = vmatprep.mubr.msk.f32.mxu0 %vm4295_vm0, %v4294_v0  ;;  %3522 = vmatprep.mubr.msk.f32.mxu1 %vm4295_vm0, %v4294_v0  ;;  %s5119_s14 = sld [smem:[#allocation31_spill]]  ;;  %v4626_v37 = vld [vmem:[#allocation7] sm:$0xff]  ;;  %v4632_v38 = vld [vmem:[#allocation10 + $0x18] sm:$0xff]  ;;  %v4644_v40 = vld [vmem:[#allocation8 + $0x10] sm:$0xff]  ;;  %vm3157_vm5 = vcmask 7168   ;;  %s4297_s9 = smov [#allocation20]  }
  0x95   :  { %s5120_s16 = sld [smem:[#allocation36_spill]]  ;;  %v4639_v39 = vld [vmem:[#allocation8 + $0x18] sm:$0xff]  ;;  %v4649_v41 = vld [vmem:[#allocation8 + $0x8] sm:$0xff]  ;;  %v4653_v42 = vld [vmem:[#allocation10 + $0x10] sm:$0xff]  ;;  %vm3210_vm6 = vcmask 0  }
  0x96   :  { %s5121_s4 = sld [smem:[#allocation30_spill]]  ;;  %v4659_v43 = vld [vmem:[#allocation8] sm:$0xff]  ;;  %v4661_v44 = vld [vmem:[#allocation10 + $0x8] sm:$0xff]  ;;  %v3232_v50 = vld [vmem:[%s5083_s12] ss:$0 sm:$0xff]  ;;  %s3218_s12 = sshll.u32 %s4297_s9, 4  ;;  %s3219_s12 = int_to_ptr.vmem [resolvable:$true] %s3218_s12 }
  0x97   :  { %s5123_s0 = sld [smem:[#allocation33_spill]]  ;;  %v4667_v45 = vld [vmem:[#allocation10] sm:$0xff]  ;;  %s4251_s27 = scalar_lea.vmem %s3219_s12, 32 }
  0x98   :  { %v233_v1 = vld [vmem:[%s5117_s28 + $0x18] sm:$0xff]  ;;  %v232_v3 = vld [vmem:[%s5117_s28 + $0x10] sm:$0xff]  ;;  %v231_v5 = vld [vmem:[%s5117_s28 + $0x8] sm:$0xff]  ;;  %p4252_p0 = scmp.lt.s32.totalorder %s3219_s12, %s3219_s12 }
  0x99   :  { %v318_v2 = vld [vmem:[%s5118_s13 + $0x18] sm:$0xff]  ;;  %3504 = vmatpush3.msra.mxu0 %v233_v1  ;;  %v317_v4 = vld [vmem:[%s5118_s13 + $0x10] sm:$0xff]  ;;  %v316_v6 = vld [vmem:[%s5118_s13 + $0x8] sm:$0xff] }
  0x9a   :  { %3515 = vmatpush3.msra.mxu1 %v318_v2  ;;  %3505 = vmatprep.subr.mxu0 %v4294_v0  ;;  %v230_v7 = vld [vmem:[%s5117_s28] sm:$0xff]  ;;  %v480_v10 = vld [vmem:[%s5119_s14 + $0x18] sm:$0xff]  ;;  %v479_v12 = vld [vmem:[%s5119_s14 + $0x10] sm:$0xff] }
  0x9b   :  { %3516 = vmatprep.subr.mxu1 %v4294_v0  ;;  %3506 = vmatpush3.msra.mxu0 %v232_v3  ;;  %v315_v8 = vld [vmem:[%s5118_s13] sm:$0xff]  ;;  %v399_v11 = vld [vmem:[%s5120_s16 + $0x18] sm:$0xff]  ;;  %v398_v13 = vld [vmem:[%s5120_s16 + $0x10] sm:$0xff]  ;;  %s4247_s13 = scalar_lea.vmem %s3219_s12, 16 }
  0x9c   :  { %3517 = vmatpush3.msra.mxu1 %v317_v4  ;;  %3507 = vmatprep.subr.mxu0 %v4294_v0  ;;  %v478_v14 = vld [vmem:[%s5119_s14 + $0x8] sm:$0xff]  ;;  %v477_v16 = vld [vmem:[%s5119_s14] sm:$0xff]  ;;  %s5122_s14 = sld [smem:[#allocation32_spill]]  ;;  %v224_v21 = vld [vmem:[%s5121_s4 + $0x10] sm:$0xff]  ;;  %p4248_p13 = scmp.ne.s32.totalorder %s3219_s12, %s4247_s13 }
  0x9d   :  { %3518 = vmatprep.subr.mxu1 %v4294_v0  ;;  %3508 = vmatpush3.msra.mxu0 %v231_v5  ;;  %v397_v15 = vld [vmem:[%s5120_s16 + $0x8] sm:$0xff]  ;;  %v396_v17 = vld [vmem:[%s5120_s16] sm:$0xff]  ;;  %v722_v23 = vld [vmem:[%s5123_s0 + $0x18] sm:$0xff]  ;;  %p4253_p1 = scmp.lt.s32.totalorder %s4251_s27, %s4247_s13 }
  0x9e   :  { %3519 = vmatpush3.msra.mxu1 %v316_v6  ;;  %3509 = vmatprep.subr.mxu0 %v4294_v0  ;;  %v222_v18 = vld [vmem:[%s5121_s4] sm:$0xff]  ;;  %v223_v19 = vld [vmem:[%s5121_s4 + $0x8] sm:$0xff]  ;;  %v225_v24 = vld [vmem:[%s5121_s4 + $0x18] sm:$0xff] }
  0x9f   :  { %3520 = vmatprep.subr.mxu1 %v4294_v0  ;;  %3510 = vmatpush3.msra.mxu0 %v230_v7  ;;  %v226_v26 = vld [vmem:[%s5121_s4 + $0x20] sm:$0xff]  ;;  %v721_v28 = vld [vmem:[%s5123_s0 + $0x10] sm:$0xff]  ;;  %v227_v29 = vld [vmem:[%s5121_s4 + $0x28] sm:$0xff]  ;;  %p4254_p2 = por %p4253_p1, %p4252_p0 }
  0xa0   :  { %3521 = vmatpush3.msra.mxu1 %v315_v8  ;;  %3512 = vmatmul.mubr.msk.f32.vlgmr.msra.gmra.mxu0 %vm241_vm1, %v221_v9  ;;  %v228_v31 = vld [vmem:[%s5121_s4 + $0x30] sm:$0xff]  ;;  %v229_v32 = vld [vmem:[%s5121_s4 + $0x38] sm:$0xff]  ;;  %v720_v33 = vld [vmem:[%s5123_s0 + $0x8] sm:$0xff] }
  0xa1   :  { %3525 = vmatprep.subr.mxu0 %v4294_v0  ;;  %3536 = vmatprep.subr.mxu1 %v480_v10  ;;  %v719_v35 = vld [vmem:[%s5123_s0] sm:$0xff]  ;;  %v3234_v57 = vld [vmem:[#allocation11] ss:$0 sm:$0xff]  ;;  %v3236_v8 = vld [vmem:[#allocation13] ss:$0 sm:$0xff]  ;;  %p4255_p3 = pnand %p4254_p2, %p4248_p13 }
  0xa2   :  { %3523 = vmatmul.mubr.msk.f32.vlgmr.msra.gmra.mxu1 %vm241_vm1, %v221_v9  ;;  %3526 = vmatpush3.msra.mxu0 %v399_v11  ;;  %v613_v20 = vld [vmem:[%s5122_s14 + $0x18] sm:$0xff]  ;;  %v612_v22 = vld [vmem:[%s5122_s14 + $0x10] sm:$0xff]  ;;  %v611_v25 = vld [vmem:[%s5122_s14 + $0x8] sm:$0xff] }
  0xa3   :  { %3537 = vmatpush3.msra.mxu1 %v480_v10  ;;  %3527 = vmatprep.subr.mxu0 %v4294_v0  ;;  %v610_v27 = vld [vmem:[%s5122_s14] sm:$0xff] }
  0xa4   :  { %3538 = vmatprep.subr.mxu1 %v479_v12  ;;  %3528 = vmatpush3.msra.mxu0 %v398_v13 }
  0xa5   :  { %3539 = vmatpush3.msra.mxu1 %v479_v12  ;;  %3529 = vmatprep.subr.mxu0 %v4294_v0 }
  0xa6   :  { %3540 = vmatprep.subr.mxu1 %v478_v14  ;;  %3530 = vmatpush3.msra.mxu0 %v397_v15 }
  0xa7   :  { %3541 = vmatpush3.msra.mxu1 %v478_v14  ;;  %3531 = vmatprep.subr.mxu0 %v4294_v0 }
  0xa8   :  { %3542 = vmatprep.subr.mxu1 %v477_v16  ;;  %3532 = vmatpush3.msra.mxu0 %v396_v17 }
  0xa9   :  { %3533 = vmatprep.mubr.msk.f32.mxu0 %vm4295_vm0, %v4294_v0  ;;  %3543 = vmatpush3.msra.mxu1 %v477_v16 }
  0xaa   :  { %3544 = vmatprep.mubr.msk.f32.mxu1 %vm241_vm1, %v222_v18  ;;  %3534 = vmatmul.mubr.msk.f32.vlgmr.msra.gmra.mxu0 %vm241_vm1, %v221_v9 }
  0xab   :  { %3545 = vmatmul.mubr.msk.f32.vlgmr.msra.gmra.mxu1 %vm241_vm1, %v223_v19  ;;  %3556 = vmatprep.subr.mxu0 %v613_v20 }
  0xac   :  { %3547 = vmatprep.mubr.msk.f32.mxu1 %vm241_vm1, %v224_v21  ;;  %3557 = vmatpush3.msra.mxu0 %v613_v20 }
  0xad   :  { %3564 = vmatprep.mubr.msk.f32.mxu0 %vm241_vm1, %v222_v18  ;;  %3558 = vmatprep.subr.mxu0 %v612_v22 }
  0xae   :  { %3576 = vmatprep.subr.mxu1 %v722_v23  ;;  %3559 = vmatpush3.msra.mxu0 %v612_v22 }
  0xaf   :  { %3548 = vmatmul.mubr.msk.f32.gmra.mxu1 %vm241_vm1, %v225_v24  ;;  %3560 = vmatprep.subr.mxu0 %v611_v25 }
  0xb0   :  { %3550 = vmatprep.mubr.msk.f32.mxu1 %vm241_vm1, %v226_v26  ;;  %3561 = vmatpush3.msra.mxu0 %v611_v25 }
  0xb1   :  { %3577 = vmatpush3.msra.mxu1 %v722_v23  ;;  %3562 = vmatprep.subr.mxu0 %v610_v27 }
  0xb2   :  { %3578 = vmatprep.subr.mxu1 %v721_v28  ;;  %3563 = vmatpush3.msra.mxu0 %v610_v27 }
  0xb3   :  { %3551 = vmatmul.mubr.msk.f32.gmra.mxu1 %vm241_vm1, %v227_v29  ;;  %3565 = vmatmul.mubr.msk.f32.vlgmr.msra.gmra.mxu0 %vm241_vm1, %v223_v19 }
  0xb4   :  { %3596 = vmatprep.subr.mxu0 %v4294_v0  ;;  %3553 = vmatprep.mubr.msk.f32.mxu1 %vm241_vm1, %v228_v31 }
  0xb5   :  { %3597 = vmatpush3.msra.mxu0 %v4590_v30  ;;  %3567 = vmatprep.mubr.msk.f32.mxu0 %vm241_vm1, %v224_v21 }
  0xb6   :  { %3579 = vmatpush3.msra.mxu1 %v721_v28  ;;  %3598 = vmatprep.subr.mxu0 %v4294_v0 }
  0xb7   :  { %3554 = vmatmul.mubr.msk.f32.gmra.mxu1 %vm241_vm1, %v229_v32  ;;  %3580 = vmatprep.subr.mxu1 %v720_v33 }
  0xb8   :  { %3568 = vmatmul.mubr.msk.f32.gmra.mxu0 %vm241_vm1, %v225_v24  ;;  %3581 = vmatpush3.msra.mxu1 %v720_v33 }
  0xb9   :  { %3599 = vmatpush3.msra.mxu0 %v4607_v34  ;;  %3582 = vmatprep.subr.mxu1 %v719_v35 }
  0xba   :  { %3570 = vmatprep.mubr.msk.f32.mxu0 %vm241_vm1, %v226_v26  ;;  %3583 = vmatpush3.msra.mxu1 %v719_v35 }
  0xbb   :  { %3584 = vmatprep.mubr.msk.f32.mxu1 %vm241_vm1, %v222_v18  ;;  %3600 = vmatprep.subr.mxu0 %v4294_v0 }
  0xbc   :  { %3571 = vmatmul.mubr.msk.f32.gmra.mxu0 %vm241_vm1, %v227_v29  ;;  %3585 = vmatmul.mubr.msk.f32.vlgmr.msra.gmra.mxu1 %vm241_vm1, %v223_v19 }
  0xbd   :  { %3573 = vmatprep.mubr.msk.f32.mxu0 %vm241_vm1, %v228_v31  ;;  %3601 = vmatpush3.msra.mxu0 %v4618_v36 }
  0xbe   :  { %3587 = vmatprep.mubr.msk.f32.mxu1 %vm241_vm1, %v224_v21  ;;  %3602 = vmatprep.subr.mxu0 %v4294_v0 }
  0xbf   :  { %3618 = vmatprep.subr.mxu1 %v4294_v0  ;;  %3603 = vmatpush3.msra.mxu0 %v4626_v37 }
  0xc0   :  { %3574 = vmatmul.mubr.msk.f32.gmra.mxu0 %vm241_vm1, %v229_v32  ;;  %3588 = vmatmul.mubr.msk.f32.gmra.mxu1 %vm241_vm1, %v225_v24 }
  0xc1   :  { %3590 = vmatprep.mubr.msk.f32.mxu1 %vm241_vm1, %v226_v26  ;;  %3604 = vmatprep.mubr.msk.f32.mxu0 %vm4295_vm0, %v4294_v0 }
  0xc2   :  { %3607 = vmatprep.subr.mxu0 %v4294_v0  ;;  %3619 = vmatpush3.msra.mxu1 %v4632_v38 }
  0xc3   :  { %3620 = vmatprep.subr.mxu1 %v4294_v0 }
  0xc4   :  { %3591 = vmatmul.mubr.msk.f32.gmra.mxu1 %vm241_vm1, %v227_v29  ;;  %3605 = vmatmul.mubr.f32.vlgmr.msra.gmra.mxu0 %v4294_v0 }
  0xc5   :  { %3608 = vmatpush3.msra.mxu0 %v4639_v39  ;;  %3593 = vmatprep.mubr.msk.f32.mxu1 %vm241_vm1, %v228_v31 }
  0xc6   :  { %3609 = vmatprep.subr.mxu0 %v4294_v0  ;;  %3615 = vmatprep.mubr.msk.f32.mxu0 %vm4295_vm0, %v4294_v0 }
  0xc7   :  { %3610 = vmatpush3.msra.mxu0 %v4644_v40  ;;  %3621 = vmatpush3.msra.mxu1 %v4653_v42 }
  0xc8   :  { %3611 = vmatprep.subr.mxu0 %v4294_v0  ;;  %3594 = vmatmul.mubr.msk.f32.gmra.mxu1 %vm241_vm1, %v229_v32 }
  0xc9   :  { %3612 = vmatpush3.msra.mxu0 %v4649_v41  ;;  %3622 = vmatprep.subr.mxu1 %v4294_v0 }
  0xca   :  { %3613 = vmatprep.subr.mxu0 %v4294_v0  ;;  %3623 = vmatpush3.msra.mxu1 %v4661_v44 }
  0xcb   :  { %3614 = vmatpush3.msra.mxu0 %v4659_v43  ;;  %3624 = vmatprep.subr.mxu1 %v4294_v0 }
  0xcc   :  { %3616 = vmatmul.mubr.f32.vlgmr.msra.gmra.mxu0 %v4294_v0  ;;  %3625 = vmatpush3.msra.mxu1 %v4667_v45 }
  0xcd   :  { %3626 = vmatprep.mubr.msk.f32.mxu1 %vm4295_vm0, %v4294_v0  ;;  %3629 = vmatprep.subr.mxu0 %v4294_v0 }
  0xce   :  { %3627 = vmatmul.mubr.f32.vlgmr.msra.gmra.mxu1 %v4294_v0  ;;  %3630 = vmatpush3.msra.mxu0 %v4590_v30 }
  0xcf   :  { %3640 = vmatprep.subr.mxu1 %v4294_v0  ;;  %3631 = vmatprep.subr.mxu0 %v4294_v0 }
  0xd0   :  { %3641 = vmatpush3.msra.mxu1 %v4639_v39  ;;  %3632 = vmatpush3.msra.mxu0 %v4607_v34 }
  0xd1   :  { %3642 = vmatprep.subr.mxu1 %v4294_v0  ;;  %3633 = vmatprep.subr.mxu0 %v4294_v0 }
  0xd2   :  { %3643 = vmatpush3.msra.mxu1 %v4644_v40  ;;  %3634 = vmatpush3.msra.mxu0 %v4618_v36 }
  0xd3   :  { %3644 = vmatprep.subr.mxu1 %v4294_v0  ;;  %3635 = vmatprep.subr.mxu0 %v4294_v0 }
  0xd4   :  { %3645 = vmatpush3.msra.mxu1 %v4649_v41  ;;  %3636 = vmatpush3.msra.mxu0 %v4626_v37 }
  0xd5   :  { %3646 = vmatprep.subr.mxu1 %v4294_v0  ;;  %3637 = vmatprep.mubr.msk.f32.mxu0 %vm4295_vm0, %v4294_v0 }
  0xd6   :  { %3647 = vmatpush3.msra.mxu1 %v4659_v43  ;;  %3648 = vmatprep.mubr.msk.f32.mxu1 %vm4295_vm0, %v4294_v0 }
  0xd7   :  { %3651 = vmatprep.subr.mxu0 %v4294_v0  ;;  %3662 = vmatprep.subr.mxu1 %v4294_v0 }
 0x160   :  { %v311_v46 = vpop.f32.mrf.mxu0 }
 0x161   :  { %v312_v51 = vadd.f32 %v3232_v50, %v311_v46 }
 0x162   :  { %v392_v47 = vpop.f32.mrf.mxu1  ;;  %v3513_v48 = vpop.f32.mrf.mxu0 }
 0x163   :  { %v393_v60 = vadd.f32 %v3234_v57, %v392_v47 }
 0x164   :  { %v3524_v49 = vpop.f32.mrf.mxu1 }
 0x16a   :  { %v473_v52 = vpop.f32.mrf.mxu0 }
 0x16b   :  { %v3546_v53 = vpop.f32.mrf.mxu1  ;;  %v474_v15 = vadd.f32 %v3236_v8, %v473_v52 }
 0x16c   :  { %v4702_v54 = vadd.f32 %v3546_v53, %v312_v51  ;;  %v3535_v55 = vpop.f32.mrf.mxu0 }
 0x16d   :  { %v571_v56 = vpop.f32.mrf.mxu1 }
 0x16e   :  { %v847_v31 = vadd.f32 %v571_v56, %v312_v51 }
 0x16f   :  { %v3549_v58 = vpop.f32.mrf.mxu1 }
 0x170   :  { %v4704_v59 = vadd.f32 %v3549_v58, %v312_v51 }
 0x171   :  { %v581_v61 = vpop.f32.mrf.mxu1 }
 0x172   :  { %v4706_v62 = vadd.f32 %v581_v61, %v312_v51 }
 0x173   :  { %v3552_v63 = vpop.f32.mrf.mxu1  ;;  %v3566_v2 = vpop.f32.mrf.mxu0 }
 0x174   :  { %v4708_v1 = vadd.f32 %v3552_v63, %v312_v51  ;;  %v4710_v3 = vadd.f32 %v3566_v2, %v393_v60 }
 0x175   :  { %v591_v4 = vpop.f32.mrf.mxu1  ;;  %v680_v6 = vpop.f32.mrf.mxu0 }
 0x176   :  { %v4712_v5 = vadd.f32 %v591_v4, %v312_v51 }
 0x177   :  { %v3555_v7 = vpop.f32.mrf.mxu1 }
 0x178   :  { %v4714_v9 = vadd.f32 %v3555_v7, %v312_v51  ;;  %v3569_v10 = vpop.f32.mrf.mxu0 }
 0x179   :  { %v4716_v11 = vadd.f32 %v3569_v10, %v393_v60  ;;  %v601_v12 = vpop.f32.mrf.mxu1 }
 0x17a   :  { %v4718_v13 = vadd.f32 %v601_v12, %v312_v51  ;;  %v690_v14 = vpop.f32.mrf.mxu0  ;;  %v928_v51 = vadd.f32 %v680_v6, %v393_v60 }
 0x17b   :  { %v4720_v16 = vadd.f32 %v690_v14, %v393_v60 }
 0x17c   :  { %v3572_v17 = vpop.f32.mrf.mxu0  ;;  %v3586_v18 = vpop.f32.mrf.mxu1 }
 0x17d   :  { %v4722_v19 = vadd.f32 %v3572_v17, %v393_v60  ;;  %v4724_v20 = vadd.f32 %v3586_v18, %v474_v15  ;;  %v4744_v17 = vld [vmem:[#allocation14] ss:$0 sm:$0xff] }
 0x17e   :  { %v700_v21 = vpop.f32.mrf.mxu0  ;;  %v789_v22 = vpop.f32.mrf.mxu1 }
 0x17f   :  { %v4726_v23 = vadd.f32 %v700_v21, %v393_v60 }
 0x180   :  { %v3575_v24 = vpop.f32.mrf.mxu0  ;;  %v3589_v25 = vpop.f32.mrf.mxu1 }
 0x181   :  { %v4728_v26 = vadd.f32 %v3575_v24, %v393_v60  ;;  %v4730_v27 = vadd.f32 %v3589_v25, %v474_v15 }
 0x182   :  { %v710_v28 = vpop.f32.mrf.mxu0  ;;  %v799_v29 = vpop.f32.mrf.mxu1 }
 0x183   :  { %v4732_v32 = vadd.f32 %v710_v28, %v393_v60  ;;  %v4734_v33 = vadd.f32 %v799_v29, %v474_v15  ;;  %v1006_v60 = vadd.f32 %v789_v22, %v474_v15 }
 0x184   :  { %v3592_v35 = vpop.f32.mrf.mxu1  ;;  %v917_v46 = vpop.f32.mrf.mxu0 }
 0x185   :  { %v4736_v47 = vadd.f32 %v3592_v35, %v474_v15  ;;  %v921_v48 = vadd.f32 %v917_v46, %v847_v31 }
 0x186   :  { %v809_v49 = vpop.f32.mrf.mxu1  ;;  %v3606_v50 = vpop.f32.mrf.mxu0 }
 0x187   :  { %v3263_v52 = vmul.f32 -1.442695, %v921_v48  ;;  %v4738_v53 = vadd.f32 %v809_v49, %v474_v15 }
 0x188   :  { %v3595_v55 = vpop.f32.mrf.mxu1 }
 0x189   :  { %3938 = vpow2.f32 %v3263_v52  ;;  %v4740_v57 = vadd.f32 %v3595_v55, %v474_v15 }
 0x18a   :  { %v819_v58 = vpop.f32.mrf.mxu1 }
 0x18b   :  { %v4742_v56 = vadd.f32 %v819_v58, %v474_v15 }
 0x18c   :  { %v995_v61 = vpop.f32.mrf.mxu0 }
 0x18d   :  { %v999_v63 = vadd.f32 %v995_v61, %v928_v51 }
 0x18e   :  { %v3617_v2 = vpop.f32.mrf.mxu0  ;;  %v1073_v4 = vpop.f32.mrf.mxu1 }
 0x18f   :  { %v3264_v7 = vmul.f32 -1.442695, %v999_v63  ;;  %v1074_v21 = vadd.f32 %v4744_v17, %v1073_v4 }
 0x190   :  { %v3628_v8 = vpop.f32.mrf.mxu1 }
 0x191   :  { %3940 = vpow2.f32 %v3264_v7 }
 0x196   :  { %v3939_v10 = vpop.eup %3938 }
 0x197   :  { %v925_v12 = vadd.f32 1.0, %v3939_v10 }
 0x199   :  { %3942 = vrcp.f32 %v925_v12 }
 0x19e   :  { %v3941_v14 = vpop.eup %3940 }
 0x19f   :  { %v1003_v18 = vadd.f32 1.0, %v3941_v14 }
 0x1a1   :  { %3944 = vrcp.f32 %v1003_v18 }
 0x1a6   :  { %v3943_v24 = vpop.eup %3942 }
 0x1a7   :  { %v1077_v6 = vmul.f32 %v3943_v24, %v1074_v21 }
 0x1a9   :  { %v1078_v25 = vadd.f32 %v1077_v6, %v1006_v60 }
 0x1ab   :  { %3946 = vtanh.f32 %v1078_v25 }
 0x1ae   :  { %v3945_v28 = vpop.eup %3944 }
 0x1af   :  { %v1080_v29 = vsub.f32 1.0, %v3945_v28  ;;  %v1082_v46 = vmul.f32 0.0, %v3945_v28 }
 0x1b8   :  { %v3947_v31 = vpop.eup %3946 }
 0x1b9   :  { %v1081_v35 = vmul.f32 %v3947_v31, %v1080_v29 }
 0x1bb   :  { %v1083_v48 = vadd.f32 %v1082_v46, %v1081_v35 }
 0x1bd   :  { %3638 = vmatmul.mubr.msk.f32.vlgmr.msra.gmra.mxu0 %vm241_vm1, %v1083_v48  ;;  %3649 = vmatmul.mubr.msk.f32.vlgmr.msra.gmra.mxu1 %vm241_vm1, %v1083_v48 }
 0x1be   :  { %3652 = vmatpush3.msra.mxu0 %v4632_v38  ;;  %3659 = vmatprep.mubr.msk.f32.mxu0 %vm4295_vm0, %v4294_v0 }
 0x1bf   :  { %3653 = vmatprep.subr.mxu0 %v4294_v0  ;;  %3663 = vmatpush3.msra.mxu1 %v4590_v30 }
 0x1c0   :  { %3654 = vmatpush3.msra.mxu0 %v4653_v42  ;;  %3664 = vmatprep.subr.mxu1 %v4294_v0 }
 0x1c1   :  { %3655 = vmatprep.subr.mxu0 %v4294_v0  ;;  %3665 = vmatpush3.msra.mxu1 %v4607_v34 }
 0x1c2   :  { %3656 = vmatpush3.msra.mxu0 %v4661_v44  ;;  %3666 = vmatprep.subr.mxu1 %v4294_v0 }
 0x1c3   :  { %3657 = vmatprep.subr.mxu0 %v4294_v0  ;;  %3667 = vmatpush3.msra.mxu1 %v4618_v36 }
 0x1c4   :  { %3658 = vmatpush3.msra.mxu0 %v4667_v45  ;;  %3668 = vmatprep.subr.mxu1 %v4294_v0 }
 0x1c5   :  { %3660 = vmatmul.mubr.msk.f32.vlgmr.msra.gmra.mxu0 %vm241_vm1, %v1083_v48  ;;  %3673 = vmatprep.subr.mxu0 %v4294_v0 }
 0x1c6   :  { %3674 = vmatpush3.msra.mxu0 %v4639_v39  ;;  %3669 = vmatpush3.msra.mxu1 %v4626_v37 }
 0x1c7   :  { %3675 = vmatprep.subr.mxu0 %v4294_v0  ;;  %3670 = vmatprep.mubr.msk.f32.mxu1 %vm4295_vm0, %v4294_v0 }
 0x1c8   :  { %3676 = vmatpush3.msra.mxu0 %v4644_v40  ;;  %3681 = vmatprep.mubr.msk.f32.mxu0 %vm4295_vm0, %v4294_v0 }
 0x1c9   :  { %3677 = vmatprep.subr.mxu0 %v4294_v0  ;;  %3684 = vmatprep.subr.mxu1 %v4294_v0 }
 0x1ca   :  { %3678 = vmatpush3.msra.mxu0 %v4649_v41 }
 0x1cb   :  { %3679 = vmatprep.subr.mxu0 %v4294_v0 }
 0x1cc   :  { %3680 = vmatpush3.msra.mxu0 %v4659_v43 }
 0x1cd   :  { %3695 = vmatprep.subr.mxu0 %v4294_v0 }
 0x27d   :  { %v1154_v15 = vpop.f32.mrf.mxu0  ;;  %v1232_v22 = vpop.f32.mrf.mxu1 }
 0x27e   :  { %v1158_v49 = vadd.f32 %v1154_v15, %v4702_v54  ;;  %v1236_v58 = vadd.f32 %v1232_v22, %v4710_v3 }
 0x27f   :  { %v3639_v50 = vpop.f32.mrf.mxu0  ;;  %v3650_v52 = vpop.f32.mrf.mxu1 }
 0x280   :  { %v3266_v55 = vmul.f32 -1.442695, %v1158_v49  ;;  %v3268_v63 = vmul.f32 -1.442695, %v1236_v58 }
 0x282   :  { %3948 = vpow2.f32 %v3266_v55 }
 0x283   :  { %3950 = vpow2.f32 %v3268_v63 }
 0x285   :  { %v1310_v51 = vpop.f32.mrf.mxu0 }
 0x286   :  { %v1311_v10 = vadd.f32 %v4744_v17, %v1310_v51 }
 0x287   :  { %v3661_v61 = vpop.f32.mrf.mxu0 }
 0x28f   :  { %v3949_v2 = vpop.eup %3948 }
 0x290   :  { %v1162_v4 = vadd.f32 1.0, %v3949_v2  ;;  %v3951_v7 = vpop.eup %3950 }
 0x291   :  { %v1240_v8 = vadd.f32 1.0, %v3951_v7 }
 0x292   :  { %3952 = vrcp.f32 %v1162_v4 }
 0x293   :  { %3954 = vrcp.f32 %v1240_v8 }
 0x29f   :  { %v3953_v12 = vpop.eup %3952 }
 0x2a0   :  { %v1314_v54 = vmul.f32 %v3953_v12, %v1311_v10  ;;  %v3955_v18 = vpop.eup %3954 }
 0x2a1   :  { %v1317_v21 = vsub.f32 1.0, %v3955_v18  ;;  %v1319_v60 = vmul.f32 %v3955_v18, %v1083_v48 }
 0x2a2   :  { %v1315_v14 = vadd.f32 %v1314_v54, %v4724_v20 }
 0x2a4   :  { %3956 = vtanh.f32 %v1315_v14 }
 0x2b1   :  { %v3957_v3 = vpop.eup %3956 }
 0x2b2   :  { %v1318_v24 = vmul.f32 %v3957_v3, %v1317_v21 }
 0x2b4   :  { %v1320_v6 = vadd.f32 %v1319_v60, %v1318_v24 }
 0x2b6   :  { %3671 = vmatmul.mubr.msk.f32.vlgmr.msra.gmra.mxu1 %vm241_vm1, %v1320_v6  ;;  %3682 = vmatmul.mubr.msk.f32.vlgmr.msra.gmra.mxu0 %vm241_vm1, %v1320_v6 }
 0x2b7   :  { %3685 = vmatpush3.msra.mxu1 %v4632_v38  ;;  %3692 = vmatprep.mubr.msk.f32.mxu1 %vm4295_vm0, %v4294_v0 }
 0x2b8   :  { %3686 = vmatprep.subr.mxu1 %v4294_v0  ;;  %3696 = vmatpush3.msra.mxu0 %v4590_v30 }
 0x2b9   :  { %3687 = vmatpush3.msra.mxu1 %v4653_v42  ;;  %3697 = vmatprep.subr.mxu0 %v4294_v0 }
 0x2ba   :  { %3688 = vmatprep.subr.mxu1 %v4294_v0  ;;  %3698 = vmatpush3.msra.mxu0 %v4607_v34 }
 0x2bb   :  { %3689 = vmatpush3.msra.mxu1 %v4661_v44  ;;  %3699 = vmatprep.subr.mxu0 %v4294_v0 }
 0x2bc   :  { %3690 = vmatprep.subr.mxu1 %v4294_v0  ;;  %3700 = vmatpush3.msra.mxu0 %v4618_v36 }
 0x2bd   :  { %3691 = vmatpush3.msra.mxu1 %v4667_v45  ;;  %3701 = vmatprep.subr.mxu0 %v4294_v0 }
 0x2be   :  { %3693 = vmatmul.mubr.msk.f32.vlgmr.msra.gmra.mxu1 %vm241_vm1, %v1320_v6  ;;  %3706 = vmatprep.subr.mxu1 %v4294_v0 }
 0x2bf   :  { %3707 = vmatpush3.msra.mxu1 %v4639_v39  ;;  %3702 = vmatpush3.msra.mxu0 %v4626_v37 }
 0x2c0   :  { %3708 = vmatprep.subr.mxu1 %v4294_v0  ;;  %3703 = vmatprep.mubr.msk.f32.mxu0 %vm4295_vm0, %v4294_v0 }
 0x2c1   :  { %3709 = vmatpush3.msra.mxu1 %v4644_v40  ;;  %3714 = vmatprep.mubr.msk.f32.mxu1 %vm4295_vm0, %v4294_v0 }
 0x2c2   :  { %3710 = vmatprep.subr.mxu1 %v4294_v0  ;;  %3717 = vmatprep.subr.mxu0 %v4294_v0 }
 0x2c3   :  { %3711 = vmatpush3.msra.mxu1 %v4649_v41 }
 0x2c4   :  { %3712 = vmatprep.subr.mxu1 %v4294_v0 }
 0x2c5   :  { %3713 = vmatpush3.msra.mxu1 %v4659_v43 }
 0x2c6   :  { %3728 = vmatprep.subr.mxu1 %v4294_v0 }
 0x376   :  { %v1391_v20 = vpop.f32.mrf.mxu1  ;;  %v1469_v25 = vpop.f32.mrf.mxu0 }
 0x377   :  { %v1395_v28 = vadd.f32 %v1391_v20, %v4706_v62  ;;  %v1473_v46 = vadd.f32 %v1469_v25, %v4720_v16 }
 0x378   :  { %v3672_v29 = vpop.f32.mrf.mxu1  ;;  %v3683_v31 = vpop.f32.mrf.mxu0 }
 0x379   :  { %v3271_v35 = vmul.f32 -1.442695, %v1395_v28  ;;  %v3273_v22 = vmul.f32 -1.442695, %v1473_v46 }
 0x37b   :  { %3958 = vpow2.f32 %v3271_v35 }
 0x37c   :  { %3960 = vpow2.f32 %v3273_v22 }
 0x37e   :  { %v1547_v48 = vpop.f32.mrf.mxu1 }
 0x37f   :  { %v1548_v58 = vadd.f32 %v4744_v17, %v1547_v48 }
 0x380   :  { %v3694_v15 = vpop.f32.mrf.mxu1 }
 0x388   :  { %v3959_v49 = vpop.eup %3958 }
 0x389   :  { %v1399_v50 = vadd.f32 1.0, %v3959_v49  ;;  %v3961_v52 = vpop.eup %3960 }
 0x38a   :  { %v1477_v55 = vadd.f32 1.0, %v3961_v52 }
 0x38b   :  { %3962 = vrcp.f32 %v1399_v50 }
 0x38c   :  { %3964 = vrcp.f32 %v1477_v55 }
 0x398   :  { %v3963_v51 = vpop.eup %3962 }
 0x399   :  { %v1551_v62 = vmul.f32 %v3963_v51, %v1548_v58  ;;  %v3965_v63 = vpop.eup %3964 }
 0x39a   :  { %v1554_v2 = vsub.f32 1.0, %v3965_v63  ;;  %v1556_v7 = vmul.f32 %v3965_v63, %v1320_v6 }
 0x39b   :  { %v1552_v61 = vadd.f32 %v1551_v62, %v4734_v33 }
 0x39d   :  { %3966 = vtanh.f32 %v1552_v61 }
 0x3aa   :  { %v3967_v16 = vpop.eup %3966 }
 0x3ab   :  { %v1555_v4 = vmul.f32 %v3967_v16, %v1554_v2 }
 0x3ad   :  { %v1557_v8 = vadd.f32 %v1556_v7, %v1555_v4 }
 0x3af   :  { %3704 = vmatmul.mubr.msk.f32.vlgmr.msra.gmra.mxu0 %vm241_vm1, %v1557_v8  ;;  %3715 = vmatmul.mubr.msk.f32.vlgmr.msra.gmra.mxu1 %vm241_vm1, %v1557_v8 }
 0x3b0   :  { %3718 = vmatpush3.msra.mxu0 %v4632_v38  ;;  %3725 = vmatprep.mubr.msk.f32.mxu0 %vm4295_vm0, %v4294_v0 }
 0x3b1   :  { %3719 = vmatprep.subr.mxu0 %v4294_v0  ;;  %3729 = vmatpush3.msra.mxu1 %v4590_v30 }
 0x3b2   :  { %3720 = vmatpush3.msra.mxu0 %v4653_v42  ;;  %3730 = vmatprep.subr.mxu1 %v4294_v0 }
 0x3b3   :  { %3721 = vmatprep.subr.mxu0 %v4294_v0  ;;  %3731 = vmatpush3.msra.mxu1 %v4607_v34 }
 0x3b4   :  { %3722 = vmatpush3.msra.mxu0 %v4661_v44  ;;  %3732 = vmatprep.subr.mxu1 %v4294_v0 }
 0x3b5   :  { %3723 = vmatprep.subr.mxu0 %v4294_v0  ;;  %3733 = vmatpush3.msra.mxu1 %v4618_v36 }
 0x3b6   :  { %3724 = vmatpush3.msra.mxu0 %v4667_v45  ;;  %3734 = vmatprep.subr.mxu1 %v4294_v0 }
 0x3b7   :  { %3726 = vmatmul.mubr.msk.f32.vlgmr.msra.gmra.mxu0 %vm241_vm1, %v1557_v8  ;;  %3739 = vmatprep.subr.mxu0 %v4294_v0 }
 0x3b8   :  { %3740 = vmatpush3.msra.mxu0 %v4639_v39  ;;  %3735 = vmatpush3.msra.mxu1 %v4626_v37 }
 0x3b9   :  { %3741 = vmatprep.subr.mxu0 %v4294_v0  ;;  %3736 = vmatprep.mubr.msk.f32.mxu1 %vm4295_vm0, %v4294_v0 }
 0x3ba   :  { %3742 = vmatpush3.msra.mxu0 %v4644_v40  ;;  %3747 = vmatprep.mubr.msk.f32.mxu0 %vm4295_vm0, %v4294_v0 }
 0x3bb   :  { %3743 = vmatprep.subr.mxu0 %v4294_v0  ;;  %3750 = vmatprep.subr.mxu1 %v4294_v0 }
 0x3bc   :  { %3744 = vmatpush3.msra.mxu0 %v4649_v41 }
 0x3bd   :  { %3745 = vmatprep.subr.mxu0 %v4294_v0 }
 0x3be   :  { %3746 = vmatpush3.msra.mxu0 %v4659_v43 }
 0x3bf   :  { %3761 = vmatprep.subr.mxu0 %v4294_v0 }
 0x46f   :  { %v1628_v33 = vpop.f32.mrf.mxu0  ;;  %v1706_v10 = vpop.f32.mrf.mxu1 }
 0x470   :  { %v1632_v12 = vadd.f32 %v1628_v33, %v4704_v59  ;;  %v1710_v21 = vadd.f32 %v1706_v10, %v4716_v11 }
 0x471   :  { %v3705_v54 = vpop.f32.mrf.mxu0  ;;  %v3716_v14 = vpop.f32.mrf.mxu1 }
 0x472   :  { %v3276_v18 = vmul.f32 -1.442695, %v1632_v12  ;;  %v3278_v60 = vmul.f32 -1.442695, %v1710_v21 }
 0x474   :  { %3968 = vpow2.f32 %v3276_v18 }
 0x475   :  { %3970 = vpow2.f32 %v3278_v60 }
 0x477   :  { %v1784_v3 = vpop.f32.mrf.mxu0 }
 0x478   :  { %v1785_v29 = vadd.f32 %v4744_v17, %v1784_v3 }
 0x479   :  { %v3727_v24 = vpop.f32.mrf.mxu0 }
 0x481   :  { %v3969_v6 = vpop.eup %3968 }
 0x482   :  { %v1636_v20 = vadd.f32 1.0, %v3969_v6  ;;  %v3971_v25 = vpop.eup %3970 }
 0x483   :  { %v1714_v28 = vadd.f32 1.0, %v3971_v25 }
 0x484   :  { %3972 = vrcp.f32 %v1636_v20 }
 0x485   :  { %3974 = vrcp.f32 %v1714_v28 }
 0x491   :  { %v3973_v31 = vpop.eup %3972 }
 0x492   :  { %v1788_v59 = vmul.f32 %v3973_v31, %v1785_v29  ;;  %v3975_v46 = vpop.eup %3974 }
 0x493   :  { %v1791_v48 = vsub.f32 1.0, %v3975_v46  ;;  %v1793_v22 = vmul.f32 %v3975_v46, %v1557_v8 }
 0x494   :  { %v1789_v35 = vadd.f32 %v1788_v59, %v4730_v27 }
 0x496   :  { %3976 = vtanh.f32 %v1789_v35 }
 0x4a3   :  { %v3977_v11 = vpop.eup %3976 }
 0x4a4   :  { %v1792_v15 = vmul.f32 %v3977_v11, %v1791_v48 }
 0x4a6   :  { %v1794_v49 = vadd.f32 %v1793_v22, %v1792_v15 }
 0x4a8   :  { %3737 = vmatmul.mubr.msk.f32.vlgmr.msra.gmra.mxu1 %vm241_vm1, %v1794_v49  ;;  %3748 = vmatmul.mubr.msk.f32.vlgmr.msra.gmra.mxu0 %vm241_vm1, %v1794_v49 }
 0x4a9   :  { %3751 = vmatpush3.msra.mxu1 %v4632_v38  ;;  %3758 = vmatprep.mubr.msk.f32.mxu1 %vm4295_vm0, %v4294_v0 }
 0x4aa   :  { %3752 = vmatprep.subr.mxu1 %v4294_v0  ;;  %3762 = vmatpush3.msra.mxu0 %v4590_v30 }
 0x4ab   :  { %3753 = vmatpush3.msra.mxu1 %v4653_v42  ;;  %3763 = vmatprep.subr.mxu0 %v4294_v0 }
 0x4ac   :  { %3754 = vmatprep.subr.mxu1 %v4294_v0  ;;  %3764 = vmatpush3.msra.mxu0 %v4607_v34 }
 0x4ad   :  { %3755 = vmatpush3.msra.mxu1 %v4661_v44  ;;  %3765 = vmatprep.subr.mxu0 %v4294_v0 }
 0x4ae   :  { %3756 = vmatprep.subr.mxu1 %v4294_v0  ;;  %3766 = vmatpush3.msra.mxu0 %v4618_v36 }
 0x4af   :  { %3757 = vmatpush3.msra.mxu1 %v4667_v45  ;;  %3767 = vmatprep.subr.mxu0 %v4294_v0 }
 0x4b0   :  { %3759 = vmatmul.mubr.msk.f32.vlgmr.msra.gmra.mxu1 %vm241_vm1, %v1794_v49  ;;  %3772 = vmatprep.subr.mxu1 %v4294_v0 }
 0x4b1   :  { %3773 = vmatpush3.msra.mxu1 %v4639_v39  ;;  %3768 = vmatpush3.msra.mxu0 %v4626_v37 }
 0x4b2   :  { %3774 = vmatprep.subr.mxu1 %v4294_v0  ;;  %3769 = vmatprep.mubr.msk.f32.mxu0 %vm4295_vm0, %v4294_v0 }
 0x4b3   :  { %3775 = vmatpush3.msra.mxu1 %v4644_v40  ;;  %3780 = vmatprep.mubr.msk.f32.mxu1 %vm4295_vm0, %v4294_v0 }
 0x4b4   :  { %3776 = vmatprep.subr.mxu1 %v4294_v0  ;;  %3783 = vmatprep.subr.mxu0 %v4294_v0 }
 0x4b5   :  { %3777 = vmatpush3.msra.mxu1 %v4649_v41 }
 0x4b6   :  { %3778 = vmatprep.subr.mxu1 %v4294_v0 }
 0x4b7   :  { %3779 = vmatpush3.msra.mxu1 %v4659_v43 }
 0x4b8   :  { %3794 = vmatprep.subr.mxu1 %v4294_v0 }
 0x568   :  { %v1865_v27 = vpop.f32.mrf.mxu1  ;;  %v1943_v50 = vpop.f32.mrf.mxu0 }
 0x569   :  { %v1869_v52 = vadd.f32 %v1865_v27, %v4712_v5  ;;  %v1947_v62 = vadd.f32 %v1943_v50, %v4726_v23 }
 0x56a   :  { %v3738_v55 = vpop.f32.mrf.mxu1  ;;  %v3749_v58 = vpop.f32.mrf.mxu0 }
 0x56b   :  { %v3281_v51 = vmul.f32 -1.442695, %v1869_v52  ;;  %v3283_v2 = vmul.f32 -1.442695, %v1947_v62 }
 0x56d   :  { %3978 = vpow2.f32 %v3281_v51 }
 0x56e   :  { %3980 = vpow2.f32 %v3283_v2 }
 0x570   :  { %v2021_v61 = vpop.f32.mrf.mxu1 }
 0x571   :  { %v2022_v33 = vadd.f32 %v4744_v17, %v2021_v61 }
 0x572   :  { %v3760_v63 = vpop.f32.mrf.mxu1 }
 0x57a   :  { %v3979_v16 = vpop.eup %3978 }
 0x57b   :  { %v1873_v4 = vadd.f32 1.0, %v3979_v16  ;;  %v3981_v7 = vpop.eup %3980 }
 0x57c   :  { %v1951_v8 = vadd.f32 1.0, %v3981_v7 }
 0x57d   :  { %3982 = vrcp.f32 %v1873_v4 }
 0x57e   :  { %3984 = vrcp.f32 %v1951_v8 }
 0x58a   :  { %v3983_v10 = vpop.eup %3982 }
 0x58b   :  { %v2025_v5 = vmul.f32 %v3983_v10, %v2022_v33  ;;  %v3985_v54 = vpop.eup %3984 }
 0x58c   :  { %v2028_v14 = vsub.f32 1.0, %v3985_v54  ;;  %v2030_v21 = vmul.f32 %v3985_v54, %v1794_v49  ;;  %v2749_v54 = vld [vmem:[#allocation17 + $0x10] sm:$0xff] }
 0x58d   :  { %v2026_v12 = vadd.f32 %v2025_v5, %v4738_v53 }
 0x58f   :  { %3986 = vtanh.f32 %v2026_v12 }
 0x59c   :  { %v3987_v23 = vpop.eup %3986 }
 0x59d   :  { %v2029_v18 = vmul.f32 %v3987_v23, %v2028_v14  ;;  %v2747_v14 = vld [vmem:[#allocation17] sm:$0xff] }
 0x59e   :  { %v2743_v23 = vld [vmem:[#allocation16] sm:$0xff] }
 0x59f   :  { %v2031_v3 = vadd.f32 %v2030_v21, %v2029_v18  ;;  %v2897_v18 = vld [vmem:[#allocation19 + $0x18] sm:$0xff]  ;;  %v4997_v21 = vld [vmem:[#allocation2] sm:$0xff] }
 0x5a1   :  { %3770 = vmatmul.mubr.msk.f32.vlgmr.msra.gmra.mxu0 %vm241_vm1, %v2031_v3  ;;  %3781 = vmatmul.mubr.msk.f32.vlgmr.msra.gmra.mxu1 %vm241_vm1, %v2031_v3 }
 0x5a2   :  { %3784 = vmatpush3.msra.mxu0 %v4632_v38  ;;  %3791 = vmatprep.mubr.msk.f32.mxu0 %vm4295_vm0, %v4294_v0 }
 0x5a3   :  { %3785 = vmatprep.subr.mxu0 %v4294_v0  ;;  %3795 = vmatpush3.msra.mxu1 %v4590_v30 }
 0x5a4   :  { %3786 = vmatpush3.msra.mxu0 %v4653_v42  ;;  %3796 = vmatprep.subr.mxu1 %v4294_v0 }
 0x5a5   :  { %3787 = vmatprep.subr.mxu0 %v4294_v0  ;;  %3797 = vmatpush3.msra.mxu1 %v4607_v34 }
 0x5a6   :  { %3788 = vmatpush3.msra.mxu0 %v4661_v44  ;;  %3798 = vmatprep.subr.mxu1 %v4294_v0 }
 0x5a7   :  { %3789 = vmatprep.subr.mxu0 %v4294_v0  ;;  %3799 = vmatpush3.msra.mxu1 %v4618_v36 }
 0x5a8   :  { %3790 = vmatpush3.msra.mxu0 %v4667_v45  ;;  %3800 = vmatprep.subr.mxu1 %v4294_v0 }
 0x5a9   :  { %3792 = vmatmul.mubr.msk.f32.vlgmr.msra.gmra.mxu0 %vm241_vm1, %v2031_v3  ;;  %3805 = vmatprep.subr.mxu0 %v4294_v0 }
 0x5aa   :  { %3806 = vmatpush3.msra.mxu0 %v4639_v39  ;;  %3801 = vmatpush3.msra.mxu1 %v4626_v37 }
 0x5ab   :  { %3807 = vmatprep.subr.mxu0 %v4294_v0  ;;  %3802 = vmatprep.mubr.msk.f32.mxu1 %vm4295_vm0, %v4294_v0 }
 0x5ac   :  { %3808 = vmatpush3.msra.mxu0 %v4644_v40  ;;  %3813 = vmatprep.mubr.msk.f32.mxu0 %vm4295_vm0, %v4294_v0 }
 0x5ad   :  { %3809 = vmatprep.subr.mxu0 %v4294_v0  ;;  %3816 = vmatprep.subr.mxu1 %v4294_v0 }
 0x5ae   :  { %3810 = vmatpush3.msra.mxu0 %v4649_v41 }
 0x5af   :  { %3811 = vmatprep.subr.mxu0 %v4294_v0 }
 0x5b0   :  { %3812 = vmatpush3.msra.mxu0 %v4659_v43 }
 0x5b1   :  { %3827 = vmatprep.subr.mxu0 %v4294_v0 }
 0x661   :  { %v2102_v53 = vpop.f32.mrf.mxu0  ;;  %v2180_v24 = vpop.f32.mrf.mxu1 }
 0x662   :  { %v2106_v60 = vadd.f32 %v2102_v53, %v4708_v1  ;;  %v2184_v28 = vadd.f32 %v2180_v24, %v4722_v19  ;;  %v2987_v53 = vld [vmem:[%s5092_s21 + $0x18] sm:$0xff]  ;;  %v2896_v24 = vld [vmem:[#allocation19 + $0x10] sm:$0xff] }
 0x663   :  { %v3771_v6 = vpop.f32.mrf.mxu0  ;;  %v3782_v20 = vpop.f32.mrf.mxu1 }
 0x664   :  { %v3286_v25 = vmul.f32 -1.442695, %v2106_v60  ;;  %v3288_v59 = vmul.f32 -1.442695, %v2184_v28  ;;  %v2986_v60 = vld [vmem:[%s5092_s21 + $0x10] sm:$0xff]  ;;  %v2895_v6 = vld [vmem:[#allocation19 + $0x8] sm:$0xff] }
 0x665   :  { %v2985_v20 = vld [vmem:[%s5092_s21 + $0x8] sm:$0xff]  ;;  %v2984_v28 = vld [vmem:[%s5092_s21] sm:$0xff] }
 0x666   :  { %3988 = vpow2.f32 %v3286_v25  ;;  %v2894_v25 = vld [vmem:[#allocation19] sm:$0xff] }
 0x667   :  { %3990 = vpow2.f32 %v3288_v59  ;;  %v3136_v59 = vld [vmem:[%s5094_s23] sm:$0xff] }
 0x669   :  { %v2258_v29 = vpop.f32.mrf.mxu0 }
 0x66a   :  { %v2259_v15 = vadd.f32 %v4744_v17, %v2258_v29  ;;  %v3171_v29 = vld [vmem:[%s5095_s24] sm:$0xff] }
 0x66b   :  { %v3793_v31 = vpop.f32.mrf.mxu0 }
 0x66c   :  { %v4296_v31 = vmov 0  }
 0x66d   :  { %3936 = vset.pattern.permute.xlu1 %v4296_v31  ;;  %3937 = vset.pattern.permute.xlu0 %v4296_v31 }
 0x66e   :  { %3186 = vperm.xlu1 %3936, %v3171_v29  }
 0x672   :  { %3150 = vperm.xlu1 %3936, %v3136_v59  }
 0x673   :  { %v3989_v35 = vpop.eup %3988 }
 0x674   :  { %v2110_v46 = vadd.f32 1.0, %v3989_v35  ;;  %v3991_v48 = vpop.eup %3990 }
 0x675   :  { %v2188_v11 = vadd.f32 1.0, %v3991_v48 }
 0x676   :  { %3992 = vrcp.f32 %v2110_v46 }
 0x677   :  { %3994 = vrcp.f32 %v2188_v11 }
 0x683   :  { %v3993_v22 = vpop.eup %3992 }
 0x684   :  { %v2262_v1 = vmul.f32 %v3993_v22, %v2259_v15  ;;  %v3995_v27 = vpop.eup %3994 }
 0x685   :  { %v2265_v50 = vsub.f32 1.0, %v3995_v27  ;;  %v2267_v55 = vmul.f32 %v3995_v27, %v2031_v3  ;;  %v4026_v3 = vld [vmem:[#allocation5] sm:$0xff] }
 0x686   :  { %v2263_v49 = vadd.f32 %v2262_v1, %v4736_v47 }
 0x688   :  { %3996 = vtanh.f32 %v2263_v49 }
 0x695   :  { %v3997_v19 = vpop.eup %3996 }
 0x696   :  { %v2266_v52 = vmul.f32 %v3997_v19, %v2265_v50 }
 0x698   :  { %v2268_v58 = vadd.f32 %v2267_v55, %v2266_v52 }
 0x69a   :  { %3803 = vmatmul.mubr.msk.f32.vlgmr.msra.gmra.mxu1 %vm241_vm1, %v2268_v58  ;;  %3814 = vmatmul.mubr.msk.f32.vlgmr.msra.gmra.mxu0 %vm241_vm1, %v2268_v58 }
 0x69b   :  { %3817 = vmatpush3.msra.mxu1 %v4632_v38  ;;  %3824 = vmatprep.mubr.msk.f32.mxu1 %vm4295_vm0, %v4294_v0 }
 0x69c   :  { %3818 = vmatprep.subr.mxu1 %v4294_v0  ;;  %3828 = vmatpush3.msra.mxu0 %v4590_v30 }
 0x69d   :  { %3819 = vmatpush3.msra.mxu1 %v4653_v42  ;;  %3829 = vmatprep.subr.mxu0 %v4294_v0 }
 0x69e   :  { %3820 = vmatprep.subr.mxu1 %v4294_v0  ;;  %3830 = vmatpush3.msra.mxu0 %v4607_v34 }
 0x69f   :  { %3821 = vmatpush3.msra.mxu1 %v4661_v44  ;;  %3831 = vmatprep.subr.mxu0 %v4294_v0 }
 0x6a0   :  { %3822 = vmatprep.subr.mxu1 %v4294_v0  ;;  %3832 = vmatpush3.msra.mxu0 %v4618_v36 }
 0x6a1   :  { %3823 = vmatpush3.msra.mxu1 %v4667_v45  ;;  %3833 = vmatprep.subr.mxu0 %v4294_v0 }
 0x6a2   :  { %3825 = vmatmul.mubr.msk.f32.vlgmr.msra.gmra.mxu1 %vm241_vm1, %v2268_v58  ;;  %3838 = vmatprep.subr.mxu1 %v4294_v0 }
 0x6a3   :  { %3839 = vmatpush3.msra.mxu1 %v4639_v39  ;;  %3834 = vmatpush3.msra.mxu0 %v4626_v37 }
 0x6a4   :  { %3840 = vmatprep.subr.mxu1 %v4294_v0  ;;  %3835 = vmatprep.mubr.msk.f32.mxu0 %vm4295_vm0, %v4294_v0 }
 0x6a5   :  { %3841 = vmatpush3.msra.mxu1 %v4644_v40  ;;  %3846 = vmatprep.mubr.msk.f32.mxu1 %vm4295_vm0, %v4294_v0 }
 0x6a6   :  { %3842 = vmatprep.subr.mxu1 %v4294_v0  ;;  %3849 = vmatprep.subr.mxu0 %v4294_v0 }
 0x6a7   :  { %3843 = vmatpush3.msra.mxu1 %v4649_v41 }
 0x6a8   :  { %3844 = vmatprep.subr.mxu1 %v4294_v0 }
 0x6a9   :  { %3845 = vmatpush3.msra.mxu1 %v4659_v43 }
 0x6aa   :  { %3860 = vmatprep.subr.mxu1 %v4294_v0 }
 0x75a   :  { %v2339_v30 = vpop.f32.mrf.mxu1  ;;  %v2417_v34 = vpop.f32.mrf.mxu0 }
 0x75b   :  { %v2343_v36 = vadd.f32 %v2339_v30, %v4718_v13  ;;  %v2421_v47 = vadd.f32 %v2417_v34, %v4732_v32 }
 0x75c   :  { %v3804_v37 = vpop.f32.mrf.mxu1  ;;  %v3815_v39 = vpop.f32.mrf.mxu0 }
 0x75d   :  { %v3291_v40 = vmul.f32 -1.442695, %v2343_v36  ;;  %v3293_v61 = vmul.f32 -1.442695, %v2421_v47 }
 0x75f   :  { %3998 = vpow2.f32 %v3291_v40 }
 0x760   :  { %4000 = vpow2.f32 %v3293_v61  ;;  %v2980_v61 = vld [vmem:[%s5091_s20] sm:$0xff] }
 0x762   :  { %v2495_v51 = vpop.f32.mrf.mxu1 }
 0x763   :  { %v2496_v16 = vadd.f32 %v4744_v17, %v2495_v51 }
 0x764   :  { %v3826_v62 = vpop.f32.mrf.mxu1 }
 0x765   :  { %v2983_v62 = vld [vmem:[%s5091_s20 + $0x18] sm:$0xff] }
 0x76c   :  { %v3999_v41 = vpop.eup %3998 }
 0x76d   :  { %v2347_v63 = vadd.f32 1.0, %v3999_v41  ;;  %v4001_v43 = vpop.eup %4000 }
 0x76e   :  { %v2425_v2 = vadd.f32 1.0, %v4001_v43 }
 0x76f   :  { %4002 = vrcp.f32 %v2347_v63 }
 0x770   :  { %4004 = vrcp.f32 %v2425_v2 }
 0x77c   :  { %v4003_v4 = vpop.eup %4002 }
 0x77d   :  { %v2499_v13 = vmul.f32 %v4003_v4, %v2496_v16  ;;  %v4005_v8 = vpop.eup %4004 }
 0x77e   :  { %v2502_v33 = vsub.f32 1.0, %v4005_v8  ;;  %v2504_v5 = vmul.f32 %v4005_v8, %v2268_v58 }
 0x77f   :  { %v2500_v7 = vadd.f32 %v2499_v13, %v4742_v56  ;;  %v2746_v56 = vld [vmem:[#allocation16 + $0x18] sm:$0xff] }
 0x781   :  { %4006 = vtanh.f32 %v2500_v7 }
 0x78e   :  { %v4007_v32 = vpop.eup %4006 }
 0x78f   :  { %v2503_v10 = vmul.f32 %v4007_v32, %v2502_v33  ;;  %v3306_v32 = vld [vmem:[%s5093_s22] ss:$0 sm:$0xff] }
 0x791   :  { %v4969_v12 = vadd.f32 %v2504_v5, %v2503_v10 }
 0x793   :  { %3836 = vmatmul.mubr.msk.f32.vlgmr.msra.gmra.mxu0 %vm241_vm1, %v4969_v12  ;;  %3847 = vmatmul.mubr.msk.f32.vlgmr.msra.gmra.mxu1 %vm241_vm1, %v4969_v12 }
 0x794   :  { %3850 = vmatpush3.msra.mxu0 %v4632_v38  ;;  %3857 = vmatprep.mubr.msk.f32.mxu0 %vm4295_vm0, %v4294_v0  ;;  %v2750_v38 = vld [vmem:[#allocation17 + $0x18] sm:$0xff] }
 0x795   :  { %3851 = vmatprep.subr.mxu0 %v4294_v0  ;;  %3868 = vmatprep.mubr.msk.f32.mxu1 %vm4295_vm0, %v4294_v0 }
 0x796   :  { %3852 = vmatpush3.msra.mxu0 %v4653_v42  ;;  %3861 = vmatpush3.msra.mxu1 %v2750_v38  ;;  %v2745_v42 = vld [vmem:[#allocation16 + $0x10] sm:$0xff]  ;;  %v3303_v38 = vld [vmem:[%s5090_s19] ss:$0 sm:$0xff] }
 0x797   :  { %3853 = vmatprep.subr.mxu0 %v4294_v0  ;;  %3862 = vmatprep.subr.mxu1 %v4294_v0 }
 0x798   :  { %3854 = vmatpush3.msra.mxu0 %v4661_v44  ;;  %v2748_v44 = vld [vmem:[#allocation17 + $0x8] sm:$0xff]  ;;  %3863 = vmatpush3.msra.mxu1 %v2749_v54 }
 0x799   :  { %3855 = vmatprep.subr.mxu0 %v4294_v0  ;;  %3864 = vmatprep.subr.mxu1 %v4294_v0 }
 0x79a   :  { %3856 = vmatpush3.msra.mxu0 %v4667_v45  ;;  %v2744_v45 = vld [vmem:[#allocation16 + $0x8] sm:$0xff]  ;;  %3865 = vmatpush3.msra.mxu1 %v2748_v44 }
 0x79b   :  { %3858 = vmatmul.mubr.msk.f32.vlgmr.msra.gmra.mxu0 %vm241_vm1, %v4969_v12  ;;  %3871 = vmatprep.subr.mxu0 %v4294_v0 }
 0x79c   :  { %3879 = vmatprep.mubr.msk.f32.mxu0 %vm4295_vm0, %v4294_v0  ;;  %3872 = vmatpush3.msra.mxu0 %v2746_v56 }
 0x79d   :  { %3873 = vmatprep.subr.mxu0 %v4294_v0  ;;  %3866 = vmatprep.subr.mxu1 %v4294_v0 }
 0x79e   :  { %3874 = vmatpush3.msra.mxu0 %v2745_v42  ;;  %3867 = vmatpush3.msra.mxu1 %v2747_v14 }
 0x79f   :  { %3875 = vmatprep.subr.mxu0 %v4294_v0  ;;  %3869 = vmatmul.mubr.msk.f32.vlgmr.msra.gmra.mxu1 %vm241_vm1, %v4026_v3  ;;  %v3147_v3 = vlaneseq }
 0x7a0   :  { %3876 = vmatpush3.msra.mxu0 %v2744_v45  ;;  %3882 = vmatprep.subr.mxu1 %v4294_v0 }
 0x7a1   :  { %3877 = vmatprep.subr.mxu0 %v4294_v0  ;;  %3883 = vmatpush3.msra.mxu1 %v2897_v18 }
 0x7a2   :  { %3878 = vmatpush3.msra.mxu0 %v2743_v23  ;;  %3884 = vmatprep.subr.mxu1 %v4294_v0 }
 0x7a3   :  { %3893 = vmatprep.subr.mxu0 %v4294_v0  ;;  %3880 = vmatmul.mubr.msk.f32.vlgmr.msra.gmra.mxu0 %vm241_vm1, %v4997_v21 }
 0x7a4   :  { %3894 = vmatpush3.msra.mxu0 %v2987_v53  ;;  %3885 = vmatpush3.msra.mxu1 %v2896_v24  ;;  %v3148_v24 = vand.u32 127, %v3147_v3 }
 0x7a5   :  { %3895 = vmatprep.subr.mxu0 %v4294_v0  ;;  %3886 = vmatprep.subr.mxu1 %v4294_v0 }
 0x7a6   :  { %3896 = vmatpush3.msra.mxu0 %v2986_v60  ;;  %3887 = vmatpush3.msra.mxu1 %v2895_v6 }
 0x7a7   :  { %3897 = vmatprep.subr.mxu0 %v4294_v0  ;;  %3888 = vmatprep.subr.mxu1 %v4294_v0 }
 0x7a8   :  { %3898 = vmatpush3.msra.mxu0 %v2985_v20  ;;  %3889 = vmatpush3.msra.mxu1 %v2894_v25 }
 0x7a9   :  { %3899 = vmatprep.subr.mxu0 %v4294_v0  ;;  %3890 = vmatprep.mubr.msk.f32.mxu1 %vm4295_vm0, %v4294_v0 }
 0x7aa   :  { %3900 = vmatpush3.msra.mxu0 %v2984_v28  ;;  %3901 = vmatprep.mubr.msk.f32.mxu0 %vm4295_vm0, %v4294_v0 }
 0x7ab   :  { %3904 = vmatprep.subr.mxu1 %v4294_v0 }
 0x853   :  { %v2576_v35 = vpop.f32.mrf.mxu0  ;;  %v2654_v46 = vpop.f32.mrf.mxu1 }
 0x854   :  { %v2580_v48 = vadd.f32 %v2576_v35, %v4714_v9  ;;  %v2658_v1 = vadd.f32 %v2654_v46, %v4728_v26 }
 0x855   :  { %v3837_v11 = vpop.f32.mrf.mxu0  ;;  %v3848_v15 = vpop.f32.mrf.mxu1 }
 0x856   :  { %v3296_v22 = vmul.f32 -1.442695, %v2580_v48  ;;  %v3298_v50 = vmul.f32 -1.442695, %v2658_v1 }
 0x858   :  { %4008 = vpow2.f32 %v3296_v22 }
 0x859   :  { %4010 = vpow2.f32 %v3298_v50 }
 0x85b   :  { %v2732_v49 = vpop.f32.mrf.mxu0 }
 0x85c   :  { %v2733_v30 = vadd.f32 %v4744_v17, %v2732_v49  ;;  %v2981_v17 = vld [vmem:[%s5091_s20 + $0x8] sm:$0xff] }
 0x85d   :  { %v3859_v27 = vpop.f32.mrf.mxu0 }
 0x85f   :  { %v2817_v41 = vpop.f32.mrf.mxu1 }
 0x861   :  { %v3870_v63 = vpop.f32.mrf.mxu1 }
 0x863   :  { %v2890_v43 = vpop.f32.mrf.mxu0 }
 0x864   :  { %v2891_v2 = vadd.f32 %v2890_v43, %v2817_v41 }
 0x865   :  { %v4009_v19 = vpop.eup %4008  ;;  %v3881_v16 = vpop.f32.mrf.mxu0 }
 0x866   :  { %v2584_v52 = vadd.f32 1.0, %v4009_v19  ;;  %v4011_v55 = vpop.eup %4010 }
 0x867   :  { %v2662_v58 = vadd.f32 1.0, %v4011_v55 }
 0x868   :  { %4012 = vrcp.f32 %v2584_v52 }
 0x869   :  { %4014 = vrcp.f32 %v2662_v58 }
 0x875   :  { %v4013_v34 = vpop.eup %4012 }
 0x876   :  { %v2736_v9 = vmul.f32 %v4013_v34, %v2733_v30  ;;  %v4015_v37 = vpop.eup %4014 }
 0x877   :  { %v2739_v39 = vsub.f32 1.0, %v4015_v37  ;;  %v2741_v47 = vmul.f32 %v4015_v37, %v4969_v12 }
 0x878   :  { %v2737_v36 = vadd.f32 %v2736_v9, %v4740_v57  ;;  %v2982_v57 = vld [vmem:[%s5091_s20 + $0x10] sm:$0xff] }
 0x87a   :  { %4016 = vtanh.f32 %v2737_v36 }
 0x887   :  { %v4017_v26 = vpop.eup %4016 }
 0x888   :  { %v2740_v40 = vmul.f32 %v4017_v26, %v2739_v39 }
 0x88a   :  { %v2742_v51 = vadd.f32 %v2741_v47, %v2740_v40 }
 0x88c   :  { %3891 = vmatmul.mubr.msk.f32.vlgmr.msra.gmra.mxu1 %vm241_vm1, %v2742_v51  ;;  %3902 = vmatmul.mubr.msk.f32.vlgmr.msra.gmra.mxu0 %vm241_vm1, %v2742_v51 }
 0x88d   :  { %3905 = vmatpush3.msra.mxu1 %v2983_v62  ;;  %3912 = vmatprep.mubr.msk.f32.mxu1 %vm4295_vm0, %v4294_v0 }
 0x88e   :  { %3906 = vmatprep.subr.mxu1 %v4294_v0 }
 0x88f   :  { %3907 = vmatpush3.msra.mxu1 %v2982_v57 }
 0x890   :  { %3908 = vmatprep.subr.mxu1 %v4294_v0 }
 0x891   :  { %3909 = vmatpush3.msra.mxu1 %v2981_v17 }
 0x892   :  { %3910 = vmatprep.subr.mxu1 %v4294_v0 }
 0x893   :  { %3911 = vmatpush3.msra.mxu1 %v2980_v61 }
 0x894   :  { %3913 = vmatmul.mubr.msk.f32.vlgmr.msra.gmra.mxu1 %vm241_vm1, %v4997_v21  ;;  %v3187_v21 = vpop.permute.xlu1 %3186 }
 0x895   :  { %vm3188_vm4 = vcmp.eq.s32.totalorder %v3148_v24, %v3187_v21 }
 0x898   :  { %v3151_v6 = vpop.permute.xlu1 %3150 }
 0x899   :  { %vm3152_vm3 = vcmp.eq.s32.totalorder %v3148_v24, %v3151_v6 }
 0x94c   :  { %v2967_v4 = vpop.f32.mrf.mxu1  ;;  %v3054_v13 = vpop.f32.mrf.mxu0 }
 0x94d   :  { %v2971_v12 = vadd.f32 %v2967_v4, %v2891_v2 }
 0x94e   :  { %v3892_v7 = vpop.f32.mrf.mxu1  ;;  %v3903_v8 = vpop.f32.mrf.mxu0 }
 0x94f   :  { %v2979_v54 = vadd.f32 %v3303_v38, %v2971_v12 }
 0x951   :  { %v3153_v25 = vsel %vm3152_vm3, %v2979_v54, 0.0 }
 0x954   :  { %v3124_v33 = vpop.f32.mrf.mxu1 }
 0x955   :  { %v3125_v10 = vadd.f32 %v3124_v33, %v3054_v13 }
 0x956   :  { %v3914_v0 = vpop.f32.mrf.mxu1 }
 0x957   :  { %v3135_v5 = vadd.f32 %v3306_v32, %v3125_v10 }
 0x959   :  { %v3173_v56 = vsel %vm3172_vm2, %v3135_v5, -inf  ;;  %v3189_v28 = vsel %vm3188_vm4, %v3135_v5, 0.0 }
 0x95a   :  { %3174 = vmax.xlane.f32.xlu0 %v3173_v56  ;;  %v3190_v29 = vsel %vm3172_vm2, %v3189_v28, 0.0 }
 0x95e   :  { %3137 = vmax.xlane.f32.xlu0 %v2979_v54 }
 0x9e3   :  { %v3175_v42 = vpop.xlane.xlu0 %3174 }
 0x9e4   :  { %v3176_v44 = vsub.f32 %v3135_v5, %v3175_v42 }
 0x9e6   :  { %v3177_v45 = vmul.f32 1.442695, %v3176_v44 }
 0x9e7   :  { %v3138_v14 = vpop.xlane.xlu0 %3137 }
 0x9e8   :  { %4018 = vpow2.f32 %v3177_v45  ;;  %v3139_v23 = vsub.f32 %v2979_v54, %v3138_v14 }
 0x9ea   :  { %v3140_v18 = vmul.f32 1.442695, %v3139_v23 }
 0x9ec   :  { %4020 = vpow2.f32 %v3140_v18 }
 0x9f5   :  { %v4019_v53 = vpop.eup %4018 }
 0x9f6   :  { %v3179_v60 = vsel %vm3172_vm2, %v4019_v53, 0.0 }
 0x9f7   :  { %3180 = vadd.xlane.f32.xlu1 %v3179_v60 }
 0x9f9   :  { %v4021_v20 = vpop.eup %4020 }
 0x9fa   :  { %3142 = vadd.xlane.f32.xlu0 %v4021_v20 }
 0x9fe   :  { %3154 = vadd.xlane.f32.xlu0 %v3153_v25 }
 0xa02   :  { %3191 = vadd.xlane.f32.xlu0 %v3190_v29 }
 0xa80   :  { %v3181_v31 = vpop.xlane.xlu1 %3180 }
 0xa81   :  { %4022 = vlog2.f32 %v3181_v31 }
 0xa83   :  { %v3143_v59 = vpop.xlane.xlu0 %3142 }
 0xa84   :  { %4024 = vlog2.f32 %v3143_v59 }
 0xa87   :  { %v3155_v11 = vpop.xlane.xlu0 %3154 }
 0xa8b   :  { %v3192_v27 = vpop.xlane.xlu0 %3191 }
 0xa8e   :  { %v4023_v35 = vpop.eup %4022 }
 0xa8f   :  { %v3183_v46 = vmul.f32 0.6931472, %v4023_v35 }
 0xa91   :  { %v4025_v48 = vpop.eup %4024  ;;  %v3184_v1 = vadd.f32 %v3183_v46, %v3175_v42 }
 0xa92   :  { %v3145_v15 = vmul.f32 0.6931472, %v4025_v48 }
 0xa93   :  { %v3193_v50 = vsub.f32 %v3184_v1, %v3192_v27 }
 0xa94   :  { %v3146_v22 = vadd.f32 %v3145_v15, %v3138_v14 }
 0xa95   :  { %v3194_v52 = vsel %vm3157_vm5, %v3193_v50, 0.0 }
 0xa96   :  { %v3156_v49 = vsub.f32 %v3146_v22, %v3155_v11 }
 0xa98   :  { %v3158_v19 = vsel %vm3157_vm5, %v3156_v49, 0.0 }
 0xa99   :  { %3159 = vadd.xlane.f32.xlu0 %v3158_v19 }
 0xa9d   :  { %3195 = vadd.xlane.f32.xlu0 %v3194_v52 }
 0xb22   :  { %v3160_v55 = vpop.xlane.xlu0 %3159 }
 0xb23   :  { %v3161_v58 = vrot.slane %v3160_v55, 4 }
 0xb25   :  { %v3162_v30 = vadd.f32 %v3161_v58, %v3160_v55 }
 0xb26   :  { %v3196_v34 = vpop.xlane.xlu0 %3195 }
 0xb27   :  { %v3163_v9 = vrot.slane %v3162_v30, 2  ;;  %v3197_v36 = vrot.slane %v3196_v34, 4 }
 0xb29   :  { %v3198_v37 = vadd.f32 %v3197_v36, %v3196_v34  ;;  %v3164_v39 = vadd.f32 %v3163_v9, %v3162_v30 }
 0xb2b   :  { %v3199_v26 = vrot.slane %v3198_v37, 2  ;;  %v3165_v40 = vrot.slane %v3164_v39, 1 }
 0xb2d   :  { %v3200_v47 = vadd.f32 %v3199_v26, %v3198_v37  ;;  %v3166_v51 = vadd.f32 %v3165_v40, %v3164_v39 }
 0xb2f   :  { %3915 = vpush %v3166_v51  ;;  %v3201_v62 = vrot.slane %v3200_v47, 1 }
 0xb31   :  { %v3202_v57 = vadd.f32 %v3201_v62, %v3200_v47 }
 0xb33   :  { %3917 = vpush %v3202_v57 }
 0xb60   :  { %s3916_s19 = spop %3915 }
 0xb61   :  { %s3170_s28 = smul.f32 0.125, %s3916_s19 }
 0xb64   :  { %s3918_s22 = spop %3917 }
 0xb65   :  { %s3206_s18 = smul.f32 0.125, %s3918_s22 }
 0xb67   :  { %s3207_s4 = smul.f32 0.1, %s3206_s18 }
 0xb69   :  { %s3208_s0 = sadd.f32 %s3207_s4, %s3170_s28 }
 0xb6b   :  { %v3209_v17 = vstv %s3208_s0 }
 0xb6c   :  { %3211 = vst.msk [vmem:[#allocation20] sm:$0x1] %vm3210_vm6, %v3209_v17 }
 0xb6d   :  { %4258 = shalt.err (!%p4255_p3)
}
 0xb6e   :  { %3221 = dma.vmem_to_hbm [thread:$0]  %s3219_s12, 16, %s5096_s25, [#allocation4]  }
 0xb6f   :  { %4279 = dma.done.wait [#allocation4], 16  }
 0xb70   :  { %4280 = vsyncadd [#allocation4], 4294967280 }
 0xb71   :  { %3225 = vsyncpa [#allocation3], 1 }
 0xb72   :  { %3226 = vsyncpa [#allocation6], 1 }
 0xb73   :  { %3227 = vsyncpa [#allocation9], 1 }
 0xb74   :  { %3228 = vsyncpa [#allocation12], 1 }
 0xb75   :  { %3229 = vsyncpa [#allocation15], 1 }
 0xb76   :  { %3230 = vsyncpa [#allocation18], 1 }
 0xb77   :  { %3231 = vsyncpa [#allocation4], 1 }

</bundles_post_ra>
